<compile_context>
chip_gen: v6e
topology: v6e:2x2x1
jax: 0.10.0
libtpu: 0.0.40
codegen_flags: <defaults>
</compile_context>

<pallas_src>
import functools

import jax
import jax.numpy as jnp
from jax.experimental import pallas as pl
from jax.experimental.pallas import tpu as pltpu


# --------------------------------------------------------------------------- #
# Kernel
# --------------------------------------------------------------------------- #
def _actor_kernel(state_ref, w1_ref, b1_ref, w2_ref, b2_ref, w3_ref, b3_ref,
                  out_ref):
    """One batch tile of the 3-layer MLP. bf16 MXU operands, f32 accumulation."""
    x = state_ref[...].astype(jnp.bfloat16)                     # [Bt, Sp]

    # fc1 + ReLU  (MXU bf16 x bf16 -> f32; bias/ReLU in f32 on the VPU)
    h1 = jnp.dot(x, w1_ref[...], preferred_element_type=jnp.float32)
    h1 = jnp.maximum(h1 + b1_ref[...], 0.0)                     # [Bt, F1p] f32

    # fc2 + ReLU
    h2 = jnp.dot(h1.astype(jnp.bfloat16), w2_ref[...],
                 preferred_element_type=jnp.float32)
    h2 = jnp.maximum(h2 + b2_ref[...], 0.0)                     # [Bt, F2p] f32

    # fc3 + tanh (tanh on EUP, f32) -> bf16 lane-dense store
    h3 = jnp.dot(h2.astype(jnp.bfloat16), w3_ref[...],
                 preferred_element_type=jnp.float32)
    out_ref[...] = jnp.tanh(h3 + b3_ref[...]).astype(out_ref.dtype)


# --------------------------------------------------------------------------- #
# Tiling / wrapper helpers
# --------------------------------------------------------------------------- #
def _round_up(x, m):
    return ((x + m - 1) // m) * m


def _num_tensorcores():
    """2 on v7x (two TensorCores per chip), else 1. Best-effort string check."""
    try:
        kind = jax.devices()[0].device_kind.lower()
    except Exception:
        return 1
    if any(tag in kind for tag in ("v7", "tpu7", "7x")):
        return 2
    return 1


def _plan_batch_tiling(B, block_b, n_cores):
    """Pick (Bt, Bp, n_blocks): fewest blocks possible, but a multiple of the
    TensorCore count for large batches, tiles rounded to 16 rows (bf16 packing),
    and padding bounded by one tile's row round-up (not a whole block)."""
    n_blocks = max(1, pl.cdiv(B, block_b))
    if n_cores > 1 and B >= 32 * n_cores:       # worth splitting across cores
        n_blocks = max(n_blocks, n_cores)
    if n_cores > 1 and n_blocks > 1:            # no straggler step on v7x
        n_blocks = n_cores * pl.cdiv(n_blocks, n_cores)
    Bt = _round_up(pl.cdiv(B, n_blocks), 16)    # 16-row tiles: full bf16 vregs
    Bp = n_blocks * Bt
    return Bt, Bp, n_blocks


@functools.partial(
    jax.jit,
    static_argnames=("action_size", "block_b", "n_cores", "use_buffered"))
def _actor_forward_impl(state, w1, b1, w2, b2, w3, b3, *, action_size,
                        block_b, n_cores, use_buffered):
    B, S = state.shape
    Sp = w1.shape[0]            # state dim padded to multiple of 64 at init
    F1 = w1.shape[1]
    F2 = w2.shape[1]
    Ap = w3.shape[1]            # lane-padded action dim (multiple of 128)

    Bt, Bp, n_blocks = _plan_batch_tiling(B, block_b, n_cores)

    pad_b, pad_s = Bp - B, Sp - S
    if pad_b or pad_s:
        state = jnp.pad(state, ((0, pad_b), (0, pad_s)))

    if use_buffered:
        # Constant-index operands: single buffer, no double-buffer bookkeeping.
        def resident(shape):
            return pl.BlockSpec(shape, lambda i: (0, 0),
                                pipeline_mode=pl.Buffered(1))
    else:
        def resident(shape):
            return pl.BlockSpec(shape, lambda i: (0, 0))

    flops = 2 * Bp * (Sp * F1 + F1 * F2 + F2 * Ap)
    bytes_accessed = (4 * Bp * Sp                          # state in (f32)
                      + 2 * (Sp * F1 + F1 * F2 + F2 * Ap)  # bf16 weights
                      + 4 * (F1 + F2 + Ap)                 # f32 biases
                      + 2 * Bp * Ap)                       # bf16 output
    cost = pl.CostEstimate(flops=flops, transcendentals=Bp * Ap,
                           bytes_accessed=bytes_accessed)

    out = pl.pallas_call(
        _actor_kernel,
        out_shape=jax.ShapeDtypeStruct((Bp, Ap), jnp.bfloat16),
        grid=(n_blocks,),
        in_specs=[
            pl.BlockSpec((Bt, Sp), lambda i: (i, 0)),   # state: tiled over batch
            resident((Sp, F1)), resident((1, F1)),      # weights/biases resident
            resident((F1, F2)), resident((1, F2)),
            resident((F2, Ap)), resident((1, Ap)),
        ],
        out_specs=pl.BlockSpec((Bt, Ap), lambda i: (i, 0)),
        compiler_params=pltpu.CompilerParams(
            dimension_semantics=("parallel",)),
        cost_estimate=cost,
    )(state, w1, b1, w2, b2, w3, b3)

    # Strip batch + lane padding, restore f32 interface.
    return out[:B, :action_size].astype(jnp.float32)


_USE_BUFFERED = None  # resolved on first call (pl.Buffered(1) support probe)


def actor_forward(state, w1, b1, w2, b2, w3, b3, *, action_size, block_b=2048):
    """state: [B, state_size] f32; weights lane/sublane-padded bf16, biases f32."""
    global _USE_BUFFERED
    n_cores = _num_tensorcores()
    args = (state, w1, b1, w2, b2, w3, b3)
    kwargs = dict(action_size=action_size, block_b=block_b, n_cores=n_cores)
    if _USE_BUFFERED is None:
        try:
            out = _actor_forward_impl(*args, use_buffered=True, **kwargs)
            out = jax.block_until_ready(out)
            _USE_BUFFERED = True
            return out
        except Exception:
            # This JAX build rejects single-buffered resident specs; fall back.
            _USE_BUFFERED = False
    return _actor_forward_impl(*args, use_buffered=_USE_BUFFERED, **kwargs)


# --------------------------------------------------------------------------- #
# Parameter init (mirrors the PyTorch module's reset_parameters quirk)
# --------------------------------------------------------------------------- #
def _pad2(x, rows, cols):
    return jnp.pad(x, ((0, rows - x.shape[0]), (0, cols - x.shape[1])))


def init_actor_params(key, state_size, action_size, fc1_units=400,
                      fc2_units=300):
    """Deterministic init mirroring the PyTorch module's reset_parameters().

    Note: the original code computes fan_in as weight.size()[0] (the *output*
    dim of nn.Linear); we reproduce that choice for the uniform limits.

    Weights are stored [in, out] (kernel computes x @ W + b), zero-padded to
    tile-friendly sizes (state 33->64, 400->512, 300->384, 4->128) and cast to
    bf16. Padded units are inert (zero weights/biases), so forward semantics
    are unchanged.
    """
    k1, k2, k3, kb1, kb2, kb3 = jax.random.split(key, 6)
    lim1 = 1.0 / jnp.sqrt(jnp.float32(fc1_units))
    lim2 = 1.0 / jnp.sqrt(jnp.float32(fc2_units))
    lim3 = 3e-3

    w1 = jax.random.uniform(k1, (state_size, fc1_units), jnp.float32, -lim1, lim1)
    w2 = jax.random.uniform(k2, (fc1_units, fc2_units), jnp.float32, -lim2, lim2)
    w3 = jax.random.uniform(k3, (fc2_units, action_size), jnp.float32, -lim3, lim3)

    # nn.Linear bias default init: uniform(-1/sqrt(in_features), +...).
    bl1 = 1.0 / jnp.sqrt(jnp.float32(state_size))
    bl2 = 1.0 / jnp.sqrt(jnp.float32(fc1_units))
    bl3 = 1.0 / jnp.sqrt(jnp.float32(fc2_units))
    b1 = jax.random.uniform(kb1, (1, fc1_units), jnp.float32, -bl1, bl1)
    b2 = jax.random.uniform(kb2, (1, fc2_units), jnp.float32, -bl2, bl2)
    b3 = jax.random.uniform(kb3, (1, action_size), jnp.float32, -bl3, bl3)

    # Tile-friendly padding + bf16 weights.
    Sp = _round_up(state_size, 64)      # 33  -> 64  (fc1 contraction alignment)
    F1p = _round_up(fc1_units, 128)     # 400 -> 512
    F2p = _round_up(fc2_units, 128)     # 300 -> 384
    Ap = _round_up(action_size, 128)    # 4   -> 128

    w1p = _pad2(w1, Sp, F1p).astype(jnp.bfloat16)
    w2p = _pad2(w2, F1p, F2p).astype(jnp.bfloat16)
    w3p = _pad2(w3, F2p, Ap).astype(jnp.bfloat16)
    b1p = _pad2(b1, 1, F1p)
    b2p = _pad2(b2, 1, F2p)
    b3p = _pad2(b3, 1, Ap)
    return w1p, b1p, w2p, b2p, w3p, b3p


def actor_ref(state, w1, b1, w2, b2, w3, b3, action_size):
    """Pure-JAX f32 reference (weights upcast); padded units are inert."""
    Sp = w1.shape[0]
    state = jnp.pad(state, ((0, 0), (0, Sp - state.shape[1])))
    w1 = w1.astype(jnp.float32)
    w2 = w2.astype(jnp.float32)
    w3 = w3.astype(jnp.float32)
    h1 = jax.nn.relu(state @ w1 + b1)
    h2 = jax.nn.relu(h1 @ w2 + b2)
    return jnp.tanh(h2 @ w3 + b3)[:, :action_size]


# --------------------------------------------------------------------------- #
# Demo / self-check
# --------------------------------------------------------------------------- #
if __name__ == "__main__":
    state_size = 33     # Reacher environment state dim
    action_size = 4     # Reacher environment action dim
    batch = 8

    key = jax.random.PRNGKey(0)
    k_params, k_state = jax.random.split(key)

    params = init_actor_params(k_params, state_size, action_size)
    state = jax.random.normal(k_state, (batch, state_size), jnp.float32)

    out = actor_forward(state, *params, action_size=action_size)
    out = jax.block_until_ready(out)

    ref = actor_ref(state, *params, action_size)
    assert out.shape == (batch, action_size), out.shape
    assert out.dtype == jnp.float32, out.dtype
    assert bool(jnp.all(jnp.isfinite(out)))
    # bf16 matmul operands + bf16 output store (f32 accumulation) vs pure-f32 ref.
    assert jnp.allclose(out, ref, atol=2e-2, rtol=2e-2), (
        "mismatch vs reference: max abs diff = "
        f"{float(jnp.max(jnp.abs(out - ref)))}")

    print("KERNEL_OK")
</pallas_src>

<mosaic_0001>
module attributes {stable_mosaic.version = 11 : i64} {
  func.func @_actor_kernel(%arg0: i32, %arg1: memref<16x64xf32, #tpu.memory_space<vmem>>, %arg2: memref<64x512xbf16, #tpu.memory_space<vmem>>, %arg3: memref<1x512xf32, #tpu.memory_space<vmem>>, %arg4: memref<512x384xbf16, #tpu.memory_space<vmem>>, %arg5: memref<1x384xf32, #tpu.memory_space<vmem>>, %arg6: memref<384x128xbf16, #tpu.memory_space<vmem>>, %arg7: memref<1x128xf32, #tpu.memory_space<vmem>>, %arg8: memref<16x128xbf16, #tpu.memory_space<vmem>>) attributes {dimension_semantics = [#tpu.dimension_semantics<parallel>], iteration_bounds = array<i64: 1>, scalar_prefetch = 0 : i64, scratch_operands = 0 : i64, tpu.core_type = #tpu.core_type<tc>, window_params = [{transform_indices = @transform_0, window_bounds = array<i64: 16, 64>}, {pipeline_mode = #tpu.pipeline_mode<synchronous>, transform_indices = @transform_1, window_bounds = array<i64: 64, 512>}, {pipeline_mode = #tpu.pipeline_mode<synchronous>, transform_indices = @transform_2, window_bounds = array<i64: 1, 512>}, {pipeline_mode = #tpu.pipeline_mode<synchronous>, transform_indices = @transform_3, window_bounds = array<i64: 512, 384>}, {pipeline_mode = #tpu.pipeline_mode<synchronous>, transform_indices = @transform_4, window_bounds = array<i64: 1, 384>}, {pipeline_mode = #tpu.pipeline_mode<synchronous>, transform_indices = @transform_5, window_bounds = array<i64: 384, 128>}, {pipeline_mode = #tpu.pipeline_mode<synchronous>, transform_indices = @transform_6, window_bounds = array<i64: 1, 128>}, {transform_indices = @transform_7, window_bounds = array<i64: 16, 128>}]} {
    %c0 = arith.constant 0 : index
    %c0_0 = arith.constant 0 : index
    %0 = vector.load %arg1[%c0, %c0_0] : memref<16x64xf32, #tpu.memory_space<vmem>>, vector<16x64xf32>
    %1 = arith.truncf %0 : vector<16x64xf32> to vector<16x64xbf16>
    %c0_1 = arith.constant 0 : index
    %c0_2 = arith.constant 0 : index
    %2 = vector.load %arg2[%c0_1, %c0_2] : memref<64x512xbf16, #tpu.memory_space<vmem>>, vector<64x512xbf16>
    %cst = arith.constant dense<0.000000e+00> : vector<16x512xf32>
    %3 = tpu.matmul %1, %2, %cst {dimension_numbers = #tpu.dot_dimension_numbers<[1], [0], [0], [1], [0, 0, 1, 1], [], []>} : vector<16x64xbf16>, vector<64x512xbf16>, vector<16x512xf32> -> vector<16x512xf32>
    %c0_3 = arith.constant 0 : index
    %c0_4 = arith.constant 0 : index
    %4 = vector.load %arg3[%c0_3, %c0_4] : memref<1x512xf32, #tpu.memory_space<vmem>>, vector<1x512xf32>
    %5 = vector.broadcast %4 : vector<1x512xf32> to vector<16x512xf32>
    %6 = arith.addf %3, %5 : vector<16x512xf32>
    %cst_5 = arith.constant 0.000000e+00 : f32
    %7 = vector.broadcast %cst_5 : f32 to vector<16x512xf32>
    %8 = arith.maximumf %6, %7 : vector<16x512xf32>
    %9 = arith.truncf %8 : vector<16x512xf32> to vector<16x512xbf16>
    %c0_6 = arith.constant 0 : index
    %c0_7 = arith.constant 0 : index
    %10 = vector.load %arg4[%c0_6, %c0_7] : memref<512x384xbf16, #tpu.memory_space<vmem>>, vector<512x384xbf16>
    %cst_8 = arith.constant dense<0.000000e+00> : vector<16x384xf32>
    %11 = tpu.matmul %9, %10, %cst_8 {dimension_numbers = #tpu.dot_dimension_numbers<[1], [0], [0], [1], [0, 0, 1, 1], [], []>} : vector<16x512xbf16>, vector<512x384xbf16>, vector<16x384xf32> -> vector<16x384xf32>
    %c0_9 = arith.constant 0 : index
    %c0_10 = arith.constant 0 : index
    %12 = vector.load %arg5[%c0_9, %c0_10] : memref<1x384xf32, #tpu.memory_space<vmem>>, vector<1x384xf32>
    %13 = vector.broadcast %12 : vector<1x384xf32> to vector<16x384xf32>
    %14 = arith.addf %11, %13 : vector<16x384xf32>
    %cst_11 = arith.constant 0.000000e+00 : f32
    %15 = vector.broadcast %cst_11 : f32 to vector<16x384xf32>
    %16 = arith.maximumf %14, %15 : vector<16x384xf32>
    %17 = arith.truncf %16 : vector<16x384xf32> to vector<16x384xbf16>
    %c0_12 = arith.constant 0 : index
    %c0_13 = arith.constant 0 : index
    %18 = vector.load %arg6[%c0_12, %c0_13] : memref<384x128xbf16, #tpu.memory_space<vmem>>, vector<384x128xbf16>
    %cst_14 = arith.constant dense<0.000000e+00> : vector<16x128xf32>
    %19 = tpu.matmul %17, %18, %cst_14 {dimension_numbers = #tpu.dot_dimension_numbers<[1], [0], [0], [1], [0, 0, 1, 1], [], []>} : vector<16x384xbf16>, vector<384x128xbf16>, vector<16x128xf32> -> vector<16x128xf32>
    %c0_15 = arith.constant 0 : index
    %c0_16 = arith.constant 0 : index
    %20 = vector.load %arg7[%c0_15, %c0_16] : memref<1x128xf32, #tpu.memory_space<vmem>>, vector<1x128xf32>
    %21 = vector.broadcast %20 : vector<1x128xf32> to vector<16x128xf32>
    %22 = arith.addf %19, %21 : vector<16x128xf32>
    %23 = math.tanh %22 : vector<16x128xf32>
    %24 = arith.truncf %23 : vector<16x128xf32> to vector<16x128xbf16>
    %c0_17 = arith.constant 0 : index
    %c0_18 = arith.constant 0 : index
    %25 = vector.load %arg8[%c0_17, %c0_18] : memref<16x128xbf16, #tpu.memory_space<vmem>>, vector<16x128xbf16>
    tpu.vector_store %arg8[%c0_17, %c0_18], %24 {strides = array<i32>} : memref<16x128xbf16, #tpu.memory_space<vmem>>, vector<16x128xbf16>,
    return
  }
  func.func @transform_0(%arg0: i32) -> (i32, i32) {
    %c0_i32 = arith.constant 0 : i32
    %c0_i32_0 = arith.constant 0 : i32
    return %arg0, %c0_i32 : i32, i32
  }
  func.func @transform_1(%arg0: i32) -> (i32, i32) {
    %c0_i32 = arith.constant 0 : i32
    %c0_i32_0 = arith.constant 0 : i32
    %c0_i32_1 = arith.constant 0 : i32
    return %c0_i32, %c0_i32_0 : i32, i32
  }
  func.func @transform_2(%arg0: i32) -> (i32, i32) {
    %c0_i32 = arith.constant 0 : i32
    %c0_i32_0 = arith.constant 0 : i32
    %c0_i32_1 = arith.constant 0 : i32
    return %c0_i32, %c0_i32_0 : i32, i32
  }
  func.func @transform_3(%arg0: i32) -> (i32, i32) {
    %c0_i32 = arith.constant 0 : i32
    %c0_i32_0 = arith.constant 0 : i32
    %c0_i32_1 = arith.constant 0 : i32
    return %c0_i32, %c0_i32_0 : i32, i32
  }
  func.func @transform_4(%arg0: i32) -> (i32, i32) {
    %c0_i32 = arith.constant 0 : i32
    %c0_i32_0 = arith.constant 0 : i32
    %c0_i32_1 = arith.constant 0 : i32
    return %c0_i32, %c0_i32_0 : i32, i32
  }
  func.func @transform_5(%arg0: i32) -> (i32, i32) {
    %c0_i32 = arith.constant 0 : i32
    %c0_i32_0 = arith.constant 0 : i32
    %c0_i32_1 = arith.constant 0 : i32
    return %c0_i32, %c0_i32_0 : i32, i32
  }
  func.func @transform_6(%arg0: i32) -> (i32, i32) {
    %c0_i32 = arith.constant 0 : i32
    %c0_i32_0 = arith.constant 0 : i32
    %c0_i32_1 = arith.constant 0 : i32
    return %c0_i32, %c0_i32_0 : i32, i32
  }
  func.func @transform_7(%arg0: i32) -> (i32, i32) {
    %c0_i32 = arith.constant 0 : i32
    %c0_i32_0 = arith.constant 0 : i32
    return %arg0, %c0_i32 : i32, i32
  }
}

module attributes {stable_mosaic.version = 11 : i64} {
  func.func @_actor_kernel(%arg0: i32, %arg1: memref<16x64xf32, #tpu.memory_space<vmem>>, %arg2: memref<64x512xbf16, #tpu.memory_space<vmem>>, %arg3: memref<1x512xf32, #tpu.memory_space<vmem>>, %arg4: memref<512x384xbf16, #tpu.memory_space<vmem>>, %arg5: memref<1x384xf32, #tpu.memory_space<vmem>>, %arg6: memref<384x128xbf16, #tpu.memory_space<vmem>>, %arg7: memref<1x128xf32, #tpu.memory_space<vmem>>, %arg8: memref<16x128xbf16, #tpu.memory_space<vmem>>) attributes {dimension_semantics = [#tpu.dimension_semantics<parallel>], iteration_bounds = array<i64: 1>, scalar_prefetch = 0 : i64, scratch_operands = 0 : i64, tpu.core_type = #tpu.core_type<tc>, window_params = [{transform_indices = @transform_0, window_bounds = array<i64: 16, 64>}, {pipeline_mode = #tpu.pipeline_mode<synchronous>, transform_indices = @transform_1, window_bounds = array<i64: 64, 512>}, {pipeline_mode = #tpu.pipeline_mode<synchronous>, transform_indices = @transform_2, window_bounds = array<i64: 1, 512>}, {pipeline_mode = #tpu.pipeline_mode<synchronous>, transform_indices = @transform_3, window_bounds = array<i64: 512, 384>}, {pipeline_mode = #tpu.pipeline_mode<synchronous>, transform_indices = @transform_4, window_bounds = array<i64: 1, 384>}, {pipeline_mode = #tpu.pipeline_mode<synchronous>, transform_indices = @transform_5, window_bounds = array<i64: 384, 128>}, {pipeline_mode = #tpu.pipeline_mode<synchronous>, transform_indices = @transform_6, window_bounds = array<i64: 1, 128>}, {transform_indices = @transform_7, window_bounds = array<i64: 16, 128>}]} {
    %c0 = arith.constant 0 : index
    %c0_0 = arith.constant 0 : index
    %0 = vector.load %arg1[%c0, %c0_0] : memref<16x64xf32, #tpu.memory_space<vmem>>, vector<16x64xf32>
    %1 = arith.truncf %0 : vector<16x64xf32> to vector<16x64xbf16>
    %c0_1 = arith.constant 0 : index
    %c0_2 = arith.constant 0 : index
    %2 = vector.load %arg2[%c0_1, %c0_2] : memref<64x512xbf16, #tpu.memory_space<vmem>>, vector<64x512xbf16>
    %cst = arith.constant dense<0.000000e+00> : vector<16x512xf32>
    %3 = tpu.matmul %1, %2, %cst {dimension_numbers = #tpu.dot_dimension_numbers<[1], [0], [0], [1], [0, 0, 1, 1], [], []>} : vector<16x64xbf16>, vector<64x512xbf16>, vector<16x512xf32> -> vector<16x512xf32>
    %c0_3 = arith.constant 0 : index
    %c0_4 = arith.constant 0 : index
    %4 = vector.load %arg3[%c0_3, %c0_4] : memref<1x512xf32, #tpu.memory_space<vmem>>, vector<1x512xf32>
    %5 = vector.broadcast %4 : vector<1x512xf32> to vector<16x512xf32>
    %6 = arith.addf %3, %5 : vector<16x512xf32>
    %cst_5 = arith.constant 0.000000e+00 : f32
    %7 = vector.broadcast %cst_5 : f32 to vector<16x512xf32>
    %8 = arith.maximumf %6, %7 : vector<16x512xf32>
    %9 = arith.truncf %8 : vector<16x512xf32> to vector<16x512xbf16>
    %c0_6 = arith.constant 0 : index
    %c0_7 = arith.constant 0 : index
    %10 = vector.load %arg4[%c0_6, %c0_7] : memref<512x384xbf16, #tpu.memory_space<vmem>>, vector<512x384xbf16>
    %cst_8 = arith.constant dense<0.000000e+00> : vector<16x384xf32>
    %11 = tpu.matmul %9, %10, %cst_8 {dimension_numbers = #tpu.dot_dimension_numbers<[1], [0], [0], [1], [0, 0, 1, 1], [], []>} : vector<16x512xbf16>, vector<512x384xbf16>, vector<16x384xf32> -> vector<16x384xf32>
    %c0_9 = arith.constant 0 : index
    %c0_10 = arith.constant 0 : index
    %12 = vector.load %arg5[%c0_9, %c0_10] : memref<1x384xf32, #tpu.memory_space<vmem>>, vector<1x384xf32>
    %13 = vector.broadcast %12 : vector<1x384xf32> to vector<16x384xf32>
    %14 = arith.addf %11, %13 : vector<16x384xf32>
    %cst_11 = arith.constant 0.000000e+00 : f32
    %15 = vector.broadcast %cst_11 : f32 to vector<16x384xf32>
    %16 = arith.maximumf %14, %15 : vector<16x384xf32>
    %17 = arith.truncf %16 : vector<16x384xf32> to vector<16x384xbf16>
    %c0_12 = arith.constant 0 : index
    %c0_13 = arith.constant 0 : index
    %18 = vector.load %arg6[%c0_12, %c0_13] : memref<384x128xbf16, #tpu.memory_space<vmem>>, vector<384x128xbf16>
    %cst_14 = arith.constant dense<0.000000e+00> : vector<16x128xf32>
    %19 = tpu.matmul %17, %18, %cst_14 {dimension_numbers = #tpu.dot_dimension_numbers<[1], [0], [0], [1], [0, 0, 1, 1], [], []>} : vector<16x384xbf16>, vector<384x128xbf16>, vector<16x128xf32> -> vector<16x128xf32>
    %c0_15 = arith.constant 0 : index
    %c0_16 = arith.constant 0 : index
    %20 = vector.load %arg7[%c0_15, %c0_16] : memref<1x128xf32, #tpu.memory_space<vmem>>, vector<1x128xf32>
    %21 = vector.broadcast %20 : vector<1x128xf32> to vector<16x128xf32>
    %22 = arith.addf %19, %21 : vector<16x128xf32>
    %23 = math.tanh %22 : vector<16x128xf32>
    %24 = arith.truncf %23 : vector<16x128xf32> to vector<16x128xbf16>
    %c0_17 = arith.constant 0 : index
    %c0_18 = arith.constant 0 : index
    %25 = vector.load %arg8[%c0_17, %c0_18] : memref<16x128xbf16, #tpu.memory_space<vmem>>, vector<16x128xbf16>
    tpu.vector_store %arg8[%c0_17, %c0_18], %24 {strides = array<i32>} : memref<16x128xbf16, #tpu.memory_space<vmem>>, vector<16x128xbf16>,
    return
  }
  func.func @transform_0(%arg0: i32) -> (i32, i32) {
    %c0_i32 = arith.constant 0 : i32
    %c0_i32_0 = arith.constant 0 : i32
    return %arg0, %c0_i32 : i32, i32
  }
  func.func @transform_1(%arg0: i32) -> (i32, i32) {
    %c0_i32 = arith.constant 0 : i32
    %c0_i32_0 = arith.constant 0 : i32
    %c0_i32_1 = arith.constant 0 : i32
    return %c0_i32, %c0_i32_0 : i32, i32
  }
  func.func @transform_2(%arg0: i32) -> (i32, i32) {
    %c0_i32 = arith.constant 0 : i32
    %c0_i32_0 = arith.constant 0 : i32
    %c0_i32_1 = arith.constant 0 : i32
    return %c0_i32, %c0_i32_0 : i32, i32
  }
  func.func @transform_3(%arg0: i32) -> (i32, i32) {
    %c0_i32 = arith.constant 0 : i32
    %c0_i32_0 = arith.constant 0 : i32
    %c0_i32_1 = arith.constant 0 : i32
    return %c0_i32, %c0_i32_0 : i32, i32
  }
  func.func @transform_4(%arg0: i32) -> (i32, i32) {
    %c0_i32 = arith.constant 0 : i32
    %c0_i32_0 = arith.constant 0 : i32
    %c0_i32_1 = arith.constant 0 : i32
    return %c0_i32, %c0_i32_0 : i32, i32
  }
  func.func @transform_5(%arg0: i32) -> (i32, i32) {
    %c0_i32 = arith.constant 0 : i32
    %c0_i32_0 = arith.constant 0 : i32
    %c0_i32_1 = arith.constant 0 : i32
    return %c0_i32, %c0_i32_0 : i32, i32
  }
  func.func @transform_6(%arg0: i32) -> (i32, i32) {
    %c0_i32 = arith.constant 0 : i32
    %c0_i32_0 = arith.constant 0 : i32
    %c0_i32_1 = arith.constant 0 : i32
    return %c0_i32, %c0_i32_0 : i32, i32
  }
  func.func @transform_7(%arg0: i32) -> (i32, i32) {
    %c0_i32 = arith.constant 0 : i32
    %c0_i32_0 = arith.constant 0 : i32
    return %arg0, %c0_i32 : i32, i32
  }
}

</mosaic_0001>

<bundles_post_ra>
// kernel: _actor_forward_impl.1
= control target key start
LH: loop header
LB: loop body
LE: loop exit
PB: predicated region body
PF: predicated region fallthrough
CT: control target
= control target key end

     0   :  { %12 = vsyncpa [#allocation3], 0  ;;  %s2028_s0 = inlined_call_operand.vmem [shape: f32[16,64], index: 0, kind: input, shape index: {}]   ;;  %s2029_s1 = inlined_call_operand.hbm [shape: bf16[64,512], index: 1, kind: input, shape index: {}]   ;;  %s2030_s2 = inlined_call_operand.vmem [shape: f32[1,512], index: 2, kind: input, shape index: {}]   ;;  %s2031_s3 = inlined_call_operand.hbm [shape: bf16[512,384], index: 3, kind: input, shape index: {}]   ;;  %s2032_s4 = inlined_call_operand.vmem [shape: f32[1,384], index: 4, kind: input, shape index: {}]   ;;  %s2033_s5 = inlined_call_operand.hbm [shape: bf16[384,128], index: 5, kind: input, shape index: {}]   ;;  %s2034_s6 = inlined_call_operand.vmem [shape: f32[1,128], index: 6, kind: input, shape index: {}]   ;;  %s2035_s7 = inlined_call_operand.vmem [shape: bf16[16,128], index: 7, kind: output, shape index: {}]  }
   0x1   :  { %13 = vsyncpa [#allocation5], 0  ;;  %s1923_s24 = smov [#allocation4]  }
   0x2   :  { %s35_s25 = sshll.u32 %s1923_s24, 4  ;;  %s36_s25 = int_to_ptr.vmem [resolvable:$true] %s35_s25 }
   0x3   :  { %s1867_s26 = scalar_lea.vmem %s36_s25, 12288  ;;  %p1872_p1 = scmp.lt.s32.totalorder %s36_s25, %s36_s25 }
   0x4   :  { %p1868_p0 = scmp.ne.s32.totalorder %s36_s25, %s1867_s26  ;;  %p1873_p2 = scmp.lt.s32.totalorder %s1867_s26, %s1867_s26 }
   0x6   :  { %p1874_p3 = por %p1873_p2, %p1872_p1 }
   0x8   :  { %p1875_p4 = pnand %p1874_p3, %p1868_p0 }
   0xa   :  { %1878 = shalt.err (!%p1875_p4)
}
   0xb   :  { %s1924_s27 = smov 192   ;;  %s1925_s28 = smov 12  }
   0xc   :  { %41 = dma.hbm_to_vmem [thread:$0]  %s2031_s3, 12288, %s36_s25, [#allocation5], %s1924_s27, %s1924_s27, %s1925_s28  }
   0xd   :  { %s1926_s8 = smov [#allocation2]  }
   0xe   :  { %s21_s9 = sshll.u32 %s1926_s8, 4  ;;  %s22_s9 = int_to_ptr.vmem [resolvable:$true] %s21_s9 }
   0xf   :  { %s1887_s10 = scalar_lea.vmem %s22_s9, 2048  ;;  %p1892_p6 = scmp.lt.s32.totalorder %s22_s9, %s22_s9 }
  0x10   :  { %p1888_p5 = scmp.ne.s32.totalorder %s22_s9, %s1887_s10  ;;  %p1893_p7 = scmp.lt.s32.totalorder %s1887_s10, %s1887_s10 }
  0x12   :  { %p1894_p8 = por %p1893_p7, %p1892_p6 }
  0x14   :  { %p1895_p9 = pnand %p1894_p8, %p1888_p5 }
  0x16   :  { %1898 = shalt.err (!%p1895_p9)
}
  0x17   :  { %s1927_s11 = smov 256   ;;  %s1928_s12 = smov 16  }
  0x18   :  { %27 = dma.hbm_to_vmem [thread:$0]  %s2029_s1, 2048, %s22_s9, [#allocation3], %s1927_s11, %s1927_s11, %s1928_s12  }
  0x19   :  { %s1929_s15 = smov [#allocation6]  }
  0x1a   :  { %s49_s16 = sshll.u32 %s1929_s15, 4  ;;  %s50_s16 = int_to_ptr.vmem [resolvable:$true] %s49_s16 }
  0x1b   :  { %s1907_s3 = scalar_lea.vmem %s50_s16, 3072  ;;  %p1912_p11 = scmp.lt.s32.totalorder %s50_s16, %s50_s16 }
  0x1c   :  { %p1908_p10 = scmp.ne.s32.totalorder %s50_s16, %s1907_s3  ;;  %p1913_p12 = scmp.lt.s32.totalorder %s1907_s3, %s1907_s3 }
  0x1e   :  { %p1914_p13 = por %p1913_p12, %p1912_p11 }
  0x20   :  { %p1915_p0 = pnand %p1914_p13, %p1908_p10 }
  0x22   :  { %1918 = shalt.err (!%p1915_p0)
}
  0x23   :  { %s1930_s17 = smov 64   ;;  %s1931_s18 = smov 4  }
  0x24   :  { %55 = dma.hbm_to_vmem [thread:$0]  %s2033_s5, 3072, %s50_s16, [#allocation5], %s1930_s17, %s1930_s17, %s1931_s18  }
  0x25   :  { %1919 = dma.done.wait [#allocation3], 2048  }
  0x26   :  { %1920 = vsyncadd [#allocation3], 4294965248 }
  0x27   :  { %1921 = dma.done.wait [#allocation5], 15360  }
  0x28   :  { %1922 = vsyncadd [#allocation5], 4294951936  ;;  %v1932_v0 = vmov 0   ;;  %v1679_v1 = vld [vmem:[#allocation2 + $0x64] ss:$16 sps:$4 sm:$0xff]   ;;  %v69_v18 = vld [vmem:[%s2028_s0 + $0x8] sm:$0xff] }
  0x29   :  { %225 = vmatprep.mubr.bf16.mxu0 %v1932_v0  ;;  %268 = vmatprep.mubr.bf16.mxu1 %v1932_v0  ;;  %v1681_v2 = vld [vmem:[#allocation2 + $0x6c] ss:$16 sps:$4 sm:$0xff]   ;;  %v1683_v3 = vld [vmem:[#allocation2 + $0x60] ss:$16 sps:$4 sm:$0xff]   ;;  %v1684_v4 = vld [vmem:[#allocation2 + $0x68] ss:$16 sps:$4 sm:$0xff]  }
  0x2a   :  { %201 = vmatprep.subr.bf16.mxu0 %v1679_v1  ;;  %244 = vmatprep.subr.bf16.mxu1 %v1681_v2  ;;  %v1685_v5 = vld [vmem:[#allocation2 + $0x44] ss:$16 sps:$4 sm:$0xff]   ;;  %v1687_v6 = vld [vmem:[#allocation2 + $0x4c] ss:$16 sps:$4 sm:$0xff]   ;;  %v1689_v7 = vld [vmem:[#allocation2 + $0x40] ss:$16 sps:$4 sm:$0xff]  }
  0x2b   :  { %202 = vmatpush1.bf16.msra.mxu0 %v1683_v3  ;;  %245 = vmatpush1.bf16.msra.mxu1 %v1684_v4  ;;  %v1690_v8 = vld [vmem:[#allocation2 + $0x48] ss:$16 sps:$4 sm:$0xff]   ;;  %v1691_v9 = vld [vmem:[#allocation2 + $0x24] ss:$16 sps:$4 sm:$0xff]   ;;  %v1693_v10 = vld [vmem:[#allocation2 + $0x2c] ss:$16 sps:$4 sm:$0xff]  }
  0x2c   :  { %203 = vmatprep.subr.bf16.mxu0 %v1685_v5  ;;  %246 = vmatprep.subr.bf16.mxu1 %v1687_v6  ;;  %v1695_v11 = vld [vmem:[#allocation2 + $0x20] ss:$16 sps:$4 sm:$0xff]   ;;  %v1696_v12 = vld [vmem:[#allocation2 + $0x28] ss:$16 sps:$4 sm:$0xff]   ;;  %v1697_v13 = vld [vmem:[#allocation2 + $0x4] ss:$16 sps:$4 sm:$0xff]  }
  0x2d   :  { %v1699_v14 = vld [vmem:[#allocation2 + $0xc] ss:$16 sps:$4 sm:$0xff]   ;;  %v1701_v15 = vld [vmem:[#allocation2] ss:$16 sps:$4 sm:$0xff]   ;;  %v1702_v16 = vld [vmem:[#allocation2 + $0x8] ss:$16 sps:$4 sm:$0xff]  }
  0x2e   :  { %v68_v17 = vld [vmem:[%s2028_s0] sm:$0xff]  ;;  %v1705_v19 = vld [vmem:[#allocation4 + $0xac] ss:$12 sps:$4 sm:$0xff]   ;;  %vm189_vm0 = vcmask 523264   ;;  %v1703_v22 = vld [vmem:[#allocation4 + $0xa8] ss:$12 sps:$4 sm:$0xff]  }
  0x2f   :  { %204 = vmatpush1.bf16.msra.mxu0 %v1689_v7  ;;  %247 = vmatpush1.bf16.msra.mxu1 %v1690_v8  ;;  %v1708_v20 = vld [vmem:[#allocation4 + $0x22c] ss:$12 sps:$4 sm:$0xff]   ;;  %v70_v21 = vpack.c.bf16 %v69_v18, %v68_v17  ;;  %v1706_v23 = vld [vmem:[#allocation4 + $0x228] ss:$12 sps:$4 sm:$0xff]   ;;  %v1709_v26 = vld [vmem:[#allocation4 + $0x90] ss:$12 sps:$4 sm:$0xff]  }
  0x30   :  { %205 = vmatprep.subr.bf16.mxu0 %v1691_v9  ;;  %248 = vmatprep.subr.bf16.mxu1 %v1693_v10  ;;  %v1711_v24 = vld [vmem:[#allocation4 + $0x94] ss:$12 sps:$4 sm:$0xff]   ;;  %v1712_v27 = vld [vmem:[#allocation4 + $0x210] ss:$12 sps:$4 sm:$0xff]   ;;  %v1715_v30 = vld [vmem:[#allocation4 + $0x78] ss:$12 sps:$4 sm:$0xff]  }
  0x31   :  { %v1714_v25 = vld [vmem:[#allocation4 + $0x214] ss:$12 sps:$4 sm:$0xff]   ;;  %v1717_v28 = vld [vmem:[#allocation4 + $0x7c] ss:$12 sps:$4 sm:$0xff]   ;;  %v1718_v31 = vld [vmem:[#allocation4 + $0x1f8] ss:$12 sps:$4 sm:$0xff]  }
  0x32   :  { %v1720_v29 = vld [vmem:[#allocation4 + $0x1fc] ss:$12 sps:$4 sm:$0xff]   ;;  %v1723_v32 = vld [vmem:[#allocation4 + $0x64] ss:$12 sps:$4 sm:$0xff]   ;;  %v1721_v34 = vld [vmem:[#allocation4 + $0x60] ss:$12 sps:$4 sm:$0xff]  }
  0x33   :  { %206 = vmatpush1.bf16.msra.mxu0 %v1695_v11  ;;  %249 = vmatpush1.bf16.msra.mxu1 %v1696_v12  ;;  %v1726_v33 = vld [vmem:[#allocation4 + $0x1e4] ss:$12 sps:$4 sm:$0xff]   ;;  %v1724_v35 = vld [vmem:[#allocation4 + $0x1e0] ss:$12 sps:$4 sm:$0xff]   ;;  %v1727_v38 = vld [vmem:[#allocation4 + $0x48] ss:$12 sps:$4 sm:$0xff]  }
  0x34   :  { %207 = vmatprep.subr.bf16.mxu0 %v1697_v13  ;;  %250 = vmatprep.subr.bf16.mxu1 %v1699_v14  ;;  %v1729_v36 = vld [vmem:[#allocation4 + $0x4c] ss:$12 sps:$4 sm:$0xff]   ;;  %v1730_v39 = vld [vmem:[#allocation4 + $0x1c8] ss:$12 sps:$4 sm:$0xff]   ;;  %v1733_v42 = vld [vmem:[#allocation4 + $0x30] ss:$12 sps:$4 sm:$0xff]  }
  0x35   :  { %v1732_v37 = vld [vmem:[#allocation4 + $0x1cc] ss:$12 sps:$4 sm:$0xff]   ;;  %v1735_v40 = vld [vmem:[#allocation4 + $0x34] ss:$12 sps:$4 sm:$0xff]   ;;  %v1736_v43 = vld [vmem:[#allocation4 + $0x1b0] ss:$12 sps:$4 sm:$0xff]  }
  0x36   :  { %v1738_v41 = vld [vmem:[#allocation4 + $0x1b4] ss:$12 sps:$4 sm:$0xff]   ;;  %v1741_v44 = vld [vmem:[#allocation4 + $0x1c] ss:$12 sps:$4 sm:$0xff]   ;;  %v1739_v46 = vld [vmem:[#allocation4 + $0x18] ss:$12 sps:$4 sm:$0xff]  }
  0x37   :  { %208 = vmatpush1.bf16.msra.mxu0 %v1701_v15  ;;  %251 = vmatpush1.bf16.msra.mxu1 %v1702_v16  ;;  %v1744_v45 = vld [vmem:[#allocation4 + $0x19c] ss:$12 sps:$4 sm:$0xff]   ;;  %v1742_v47 = vld [vmem:[#allocation4 + $0x198] ss:$12 sps:$4 sm:$0xff]   ;;  %v1745_v50 = vld [vmem:[#allocation4] ss:$12 sps:$4 sm:$0xff]  }
  0x38   :  { %948 = vmatprep.subr.bf16.mxu0 %v1705_v19  ;;  %991 = vmatprep.subr.bf16.mxu1 %v1708_v20  ;;  %v1747_v48 = vld [vmem:[#allocation4 + $0x4] ss:$12 sps:$4 sm:$0xff]   ;;  %v1748_v51 = vld [vmem:[#allocation4 + $0x180] ss:$12 sps:$4 sm:$0xff]   ;;  %v1751_v54 = vld [vmem:[#allocation4 + $0x168] ss:$12 sps:$4 sm:$0xff]  }
  0x39   :  { %v1750_v49 = vld [vmem:[#allocation4 + $0x184] ss:$12 sps:$4 sm:$0xff]   ;;  %v1753_v52 = vld [vmem:[#allocation4 + $0x16c] ss:$12 sps:$4 sm:$0xff]   ;;  %v1754_v55 = vld [vmem:[#allocation4 + $0x2e8] ss:$12 sps:$4 sm:$0xff]  }
  0x3a   :  { %1440 = vmatmul.mubr.msk.bf16.vlgmr.msra.gmra.mxu0 %vm189_vm0, %v70_v21  ;;  %1441 = vmatmul.mubr.msk.bf16.vlgmr.msra.gmra.mxu1 %vm189_vm0, %v70_v21  ;;  %v1756_v53 = vld [vmem:[#allocation4 + $0x2ec] ss:$12 sps:$4 sm:$0xff]   ;;  %v1759_v56 = vld [vmem:[#allocation4 + $0x154] ss:$12 sps:$4 sm:$0xff]   ;;  %v1757_v58 = vld [vmem:[#allocation4 + $0x150] ss:$12 sps:$4 sm:$0xff]  }
  0x3b   :  { %949 = vmatpush1.bf16.msra.mxu0 %v1703_v22  ;;  %992 = vmatpush1.bf16.msra.mxu1 %v1706_v23  ;;  %v1762_v57 = vld [vmem:[#allocation4 + $0x2d4] ss:$12 sps:$4 sm:$0xff]   ;;  %v1760_v59 = vld [vmem:[#allocation4 + $0x2d0] ss:$12 sps:$4 sm:$0xff]   ;;  %v1763_v62 = vld [vmem:[#allocation4 + $0x138] ss:$12 sps:$4 sm:$0xff]   ;;  %v89_v22 = vlaneseq }
  0x3c   :  { %950 = vmatprep.subr.bf16.mxu0 %v1711_v24  ;;  %993 = vmatprep.subr.bf16.mxu1 %v1714_v25  ;;  %v1765_v60 = vld [vmem:[#allocation4 + $0x13c] ss:$12 sps:$4 sm:$0xff]   ;;  %v1766_v63 = vld [vmem:[#allocation4 + $0x2b8] ss:$12 sps:$4 sm:$0xff]   ;;  %v1769_v2 = vld [vmem:[#allocation4 + $0x120] ss:$12 sps:$4 sm:$0xff]  }
  0x3d   :  { %v1768_v61 = vld [vmem:[#allocation4 + $0x2bc] ss:$12 sps:$4 sm:$0xff]   ;;  %v1771_v0 = vld [vmem:[#allocation4 + $0x124] ss:$12 sps:$4 sm:$0xff]   ;;  %v1772_v3 = vld [vmem:[#allocation4 + $0x2a0] ss:$12 sps:$4 sm:$0xff]  }
  0x3e   :  { %v1774_v1 = vld [vmem:[#allocation4 + $0x2a4] ss:$12 sps:$4 sm:$0xff]   ;;  %v1777_v4 = vld [vmem:[#allocation4 + $0x10c] ss:$12 sps:$4 sm:$0xff]   ;;  %v1775_v6 = vld [vmem:[#allocation4 + $0x108] ss:$12 sps:$4 sm:$0xff]  }
  0x3f   :  { %951 = vmatpush1.bf16.msra.mxu0 %v1709_v26  ;;  %994 = vmatpush1.bf16.msra.mxu1 %v1712_v27  ;;  %v1780_v5 = vld [vmem:[#allocation4 + $0x28c] ss:$12 sps:$4 sm:$0xff]   ;;  %v1778_v7 = vld [vmem:[#allocation4 + $0x288] ss:$12 sps:$4 sm:$0xff]   ;;  %v1781_v10 = vld [vmem:[#allocation4 + $0xf0] ss:$12 sps:$4 sm:$0xff]  }
  0x40   :  { %952 = vmatprep.subr.bf16.mxu0 %v1717_v28  ;;  %995 = vmatprep.subr.bf16.mxu1 %v1720_v29  ;;  %v1783_v8 = vld [vmem:[#allocation4 + $0xf4] ss:$12 sps:$4 sm:$0xff]   ;;  %v1784_v11 = vld [vmem:[#allocation4 + $0x270] ss:$12 sps:$4 sm:$0xff]   ;;  %v1787_v14 = vld [vmem:[#allocation4 + $0xd8] ss:$12 sps:$4 sm:$0xff]  }
  0x41   :  { %v1786_v9 = vld [vmem:[#allocation4 + $0x274] ss:$12 sps:$4 sm:$0xff]   ;;  %v1789_v12 = vld [vmem:[#allocation4 + $0xdc] ss:$12 sps:$4 sm:$0xff]   ;;  %v1790_v15 = vld [vmem:[#allocation4 + $0x258] ss:$12 sps:$4 sm:$0xff]  }
  0x42   :  { %v1792_v13 = vld [vmem:[#allocation4 + $0x25c] ss:$12 sps:$4 sm:$0xff]   ;;  %v1795_v16 = vld [vmem:[#allocation4 + $0xc4] ss:$12 sps:$4 sm:$0xff]   ;;  %v1793_v18 = vld [vmem:[#allocation4 + $0xc0] ss:$12 sps:$4 sm:$0xff]  }
  0x43   :  { %953 = vmatpush1.bf16.msra.mxu0 %v1715_v30  ;;  %996 = vmatpush1.bf16.msra.mxu1 %v1718_v31  ;;  %v1798_v17 = vld [vmem:[#allocation4 + $0x244] ss:$12 sps:$4 sm:$0xff]   ;;  %v1796_v19 = vld [vmem:[#allocation4 + $0x240] ss:$12 sps:$4 sm:$0xff]   ;;  %v1990_v23 = vshrl.u32 %v89_v22, 7  ;;  %vm1934_vm1 = vmmov 0  }
  0x44   :  { %954 = vmatprep.subr.bf16.mxu0 %v1723_v32  ;;  %997 = vmatprep.subr.bf16.mxu1 %v1726_v33  ;;  %v1799_v20 = vld [vmem:[#allocation4 + $0x170] ss:$12 sps:$4 sm:$0xff]   ;;  %v87_v28 = vld [vmem:[%s2030_s2] sm:$0xf] }
  0x45   :  { %v1800_v21 = vld [vmem:[#allocation4 + $0x2f0] ss:$12 sps:$4 sm:$0xff]   ;;  %v95_v24 = vsub.s32 1, %v1990_v23  ;;  %v103_v25 = vsub.s32 3, %v1990_v23  ;;  %v91_v26 = vsub.s32 0, %v1990_v23  ;;  %v99_v27 = vsub.s32 2, %v1990_v23 }
  0x46   :  { %v1826_v22 = vld [vmem:[#allocation4 + $0x1a0] ss:$12 sps:$4 sm:$0xff]  }
  0x47   :  { %955 = vmatpush1.bf16.msra.mxu0 %v1721_v34  ;;  %998 = vmatpush1.bf16.msra.mxu1 %v1724_v35  ;;  %v96_v31 = vrot.slane %v87_v28, %v95_v24  ;;  %v104_v32 = vrot.slane %v87_v28, %v103_v25  ;;  %v92_v33 = vrot.slane %v87_v28, %v91_v26  ;;  %v1827_v25 = vld [vmem:[#allocation4 + $0xc8] ss:$12 sps:$4 sm:$0xff]  }
  0x48   :  { %956 = vmatprep.subr.bf16.mxu0 %v1729_v36  ;;  %999 = vmatprep.subr.bf16.mxu1 %v1732_v37  ;;  %v100_v34 = vrot.slane %v87_v28, %v99_v27  ;;  %v1828_v28 = vld [vmem:[#allocation4 + $0x248] ss:$12 sps:$4 sm:$0xff]  }
  0x4b   :  { %957 = vmatpush1.bf16.msra.mxu0 %v1727_v38  ;;  %1000 = vmatpush1.bf16.msra.mxu1 %v1730_v39 }
  0x4c   :  { %958 = vmatprep.subr.bf16.mxu0 %v1735_v40  ;;  %1001 = vmatprep.subr.bf16.mxu1 %v1738_v41 }
  0x4f   :  { %959 = vmatpush1.bf16.msra.mxu0 %v1733_v42  ;;  %1002 = vmatpush1.bf16.msra.mxu1 %v1736_v43 }
  0x50   :  { %960 = vmatprep.subr.bf16.mxu0 %v1741_v44  ;;  %1003 = vmatprep.subr.bf16.mxu1 %v1744_v45 }
  0x53   :  { %961 = vmatpush1.bf16.msra.mxu0 %v1739_v46  ;;  %1004 = vmatpush1.bf16.msra.mxu1 %v1742_v47 }
  0x54   :  { %962 = vmatprep.subr.bf16.mxu0 %v1747_v48  ;;  %1005 = vmatprep.subr.bf16.mxu1 %v1750_v49 }
  0x57   :  { %963 = vmatpush1.bf16.msra.mxu0 %v1745_v50  ;;  %1006 = vmatpush1.bf16.msra.mxu1 %v1748_v51 }
  0x58   :  { %964 = vmatprep.subr.bf16.mxu0 %v1753_v52  ;;  %1007 = vmatprep.subr.bf16.mxu1 %v1756_v53 }
  0x5b   :  { %965 = vmatpush2.bf16.msra.mxu0 %v1751_v54  ;;  %1008 = vmatpush2.bf16.msra.mxu1 %v1754_v55 }
  0x5c   :  { %966 = vmatprep.subr.bf16.mxu0 %v1759_v56  ;;  %1009 = vmatprep.subr.bf16.mxu1 %v1762_v57 }
  0x5f   :  { %967 = vmatpush2.bf16.msra.mxu0 %v1757_v58  ;;  %1010 = vmatpush2.bf16.msra.mxu1 %v1760_v59  ;;  %v1801_v59 = vld [vmem:[#allocation4 + $0xb0] ss:$12 sps:$4 sm:$0xff]  }
  0x60   :  { %968 = vmatprep.subr.bf16.mxu0 %v1765_v60  ;;  %1011 = vmatprep.subr.bf16.mxu1 %v1768_v61  ;;  %v1802_v60 = vld [vmem:[#allocation4 + $0x230] ss:$12 sps:$4 sm:$0xff]  }
  0x63   :  { %969 = vmatpush2.bf16.msra.mxu0 %v1763_v62  ;;  %1012 = vmatpush2.bf16.msra.mxu1 %v1766_v63  ;;  %v1803_v63 = vld [vmem:[#allocation4 + $0x158] ss:$12 sps:$4 sm:$0xff]  }
  0x64   :  { %970 = vmatprep.subr.bf16.mxu0 %v1771_v0  ;;  %1013 = vmatprep.subr.bf16.mxu1 %v1774_v1  ;;  %v1804_v0 = vld [vmem:[#allocation4 + $0x2d8] ss:$12 sps:$4 sm:$0xff]  }
  0x65   :  { %v1805_v1 = vld [vmem:[#allocation4 + $0x98] ss:$12 sps:$4 sm:$0xff]  }
  0x67   :  { %971 = vmatpush2.bf16.msra.mxu0 %v1769_v2  ;;  %1014 = vmatpush2.bf16.msra.mxu1 %v1772_v3  ;;  %v1806_v2 = vld [vmem:[#allocation4 + $0x218] ss:$12 sps:$4 sm:$0xff]   ;;  %v1807_v3 = vld [vmem:[#allocation4 + $0x140] ss:$12 sps:$4 sm:$0xff]  }
  0x68   :  { %972 = vmatprep.subr.bf16.mxu0 %v1777_v4  ;;  %1015 = vmatprep.subr.bf16.mxu1 %v1780_v5  ;;  %v1808_v4 = vld [vmem:[#allocation4 + $0x2c0] ss:$12 sps:$4 sm:$0xff]  }
  0x69   :  { %v1809_v5 = vld [vmem:[#allocation4 + $0x80] ss:$12 sps:$4 sm:$0xff]  }
  0x6b   :  { %973 = vmatpush2.bf16.msra.mxu0 %v1775_v6  ;;  %1016 = vmatpush2.bf16.msra.mxu1 %v1778_v7  ;;  %v1810_v6 = vld [vmem:[#allocation4 + $0x200] ss:$12 sps:$4 sm:$0xff]   ;;  %v1811_v7 = vld [vmem:[#allocation4 + $0x128] ss:$12 sps:$4 sm:$0xff]  }
  0x6c   :  { %974 = vmatprep.subr.bf16.mxu0 %v1783_v8  ;;  %1017 = vmatprep.subr.bf16.mxu1 %v1786_v9  ;;  %v1812_v8 = vld [vmem:[#allocation4 + $0x2a8] ss:$12 sps:$4 sm:$0xff]  }
  0x6d   :  { %v1813_v9 = vld [vmem:[#allocation4 + $0x68] ss:$12 sps:$4 sm:$0xff]  }
  0x6f   :  { %975 = vmatpush2.bf16.msra.mxu0 %v1781_v10  ;;  %1018 = vmatpush2.bf16.msra.mxu1 %v1784_v11  ;;  %v1814_v10 = vld [vmem:[#allocation4 + $0x1e8] ss:$12 sps:$4 sm:$0xff]   ;;  %v1815_v11 = vld [vmem:[#allocation4 + $0x110] ss:$12 sps:$4 sm:$0xff]  }
  0x70   :  { %976 = vmatprep.subr.bf16.mxu0 %v1789_v12  ;;  %1019 = vmatprep.subr.bf16.mxu1 %v1792_v13  ;;  %v1816_v12 = vld [vmem:[#allocation4 + $0x290] ss:$12 sps:$4 sm:$0xff]  }
  0x71   :  { %v1817_v13 = vld [vmem:[#allocation4 + $0x50] ss:$12 sps:$4 sm:$0xff]  }
  0x73   :  { %977 = vmatpush2.bf16.msra.mxu0 %v1787_v14  ;;  %1020 = vmatpush2.bf16.msra.mxu1 %v1790_v15  ;;  %v1818_v14 = vld [vmem:[#allocation4 + $0x1d0] ss:$12 sps:$4 sm:$0xff]   ;;  %v1819_v15 = vld [vmem:[#allocation4 + $0xf8] ss:$12 sps:$4 sm:$0xff]  }
  0x74   :  { %978 = vmatprep.subr.bf16.mxu0 %v1795_v16  ;;  %1021 = vmatprep.subr.bf16.mxu1 %v1798_v17  ;;  %v1820_v16 = vld [vmem:[#allocation4 + $0x278] ss:$12 sps:$4 sm:$0xff]  }
  0x75   :  { %v1821_v17 = vld [vmem:[#allocation4 + $0x38] ss:$12 sps:$4 sm:$0xff]  }
  0x77   :  { %979 = vmatpush2.bf16.msra.mxu0 %v1793_v18  ;;  %1022 = vmatpush2.bf16.msra.mxu1 %v1796_v19  ;;  %v1822_v18 = vld [vmem:[#allocation4 + $0x1b8] ss:$12 sps:$4 sm:$0xff]   ;;  %v1823_v19 = vld [vmem:[#allocation4 + $0xe0] ss:$12 sps:$4 sm:$0xff]  }
  0x78   :  { %1572 = vmatprep.subr.bf16.mxu0 %v1799_v20  ;;  %1594 = vmatprep.subr.bf16.mxu1 %v1800_v21  ;;  %v1824_v20 = vld [vmem:[#allocation4 + $0x260] ss:$12 sps:$4 sm:$0xff]  }
  0x79   :  { %v1825_v21 = vld [vmem:[#allocation4 + $0x20] ss:$12 sps:$4 sm:$0xff]  }
  0xfa   :  { %v227_v29 = vpop.f32.mrf.mxu0  ;;  %v270_v30 = vpop.f32.mrf.mxu1 }
  0xfb   :  { %v228_v43 = vadd.f32 %v227_v29, %v92_v33  ;;  %v271_v44 = vadd.f32 %v270_v30, %v100_v34  ;;  %v1829_v29 = vld [vmem:[#allocation4 + $0x8] ss:$12 sps:$4 sm:$0xff]  }
  0xfc   :  { %v229_v35 = vpop.f32.mrf.mxu0  ;;  %v272_v36 = vpop.f32.mrf.mxu1  ;;  %v1830_v30 = vld [vmem:[#allocation4 + $0x188] ss:$12 sps:$4 sm:$0xff]  }
  0xfd   :  { %v230_v39 = vadd.f32 %v229_v35, %v96_v31  ;;  %v273_v40 = vadd.f32 %v272_v36, %v104_v32  ;;  %v279_v55 = vmax.f32 %v228_v43, 0.0  ;;  %v281_v56 = vmax.f32 %v271_v44, 0.0  ;;  %v1835_v35 = vld [vmem:[#allocation6 + $0x68] sm:$0xff]  }
  0xfe   :  { %v231_v37 = vpop.f32.mrf.mxu0  ;;  %v274_v38 = vpop.f32.mrf.mxu1  ;;  %v1836_v36 = vld [vmem:[#allocation6 + $0x28] sm:$0xff]  }
  0xff   :  { %v232_v41 = vadd.f32 %v231_v37, %v92_v33  ;;  %v275_v42 = vadd.f32 %v274_v38, %v100_v34  ;;  %v280_v51 = vmax.f32 %v230_v39, 0.0  ;;  %v282_v52 = vmax.f32 %v273_v40, 0.0  ;;  %v1833_v33 = vld [vmem:[#allocation6 + $0x70] sm:$0xff]   ;;  %v1837_v37 = vld [vmem:[#allocation6 + $0x60] sm:$0xff]   ;;  %v1839_v39 = vld [vmem:[#allocation6 + $0x58] sm:$0xff]  }
 0x100   :  { %v233_v45 = vpop.f32.mrf.mxu0  ;;  %v276_v46 = vpop.f32.mrf.mxu1  ;;  %v1834_v34 = vld [vmem:[#allocation6 + $0x30] sm:$0xff]   ;;  %v1838_v38 = vld [vmem:[#allocation6 + $0x20] sm:$0xff]   ;;  %v1840_v40 = vld [vmem:[#allocation6 + $0x18] sm:$0xff]  }
 0x101   :  { %v234_v47 = vadd.f32 %v233_v45, %v96_v31  ;;  %v277_v48 = vadd.f32 %v276_v46, %v104_v32  ;;  %v283_v49 = vmax.f32 %v232_v41, 0.0  ;;  %v285_v50 = vmax.f32 %v275_v42, 0.0  ;;  %v1831_v31 = vld [vmem:[#allocation6 + $0x78] sm:$0xff]   ;;  %v1841_v41 = vld [vmem:[#allocation6 + $0x50] sm:$0xff]   ;;  %v1843_v43 = vld [vmem:[#allocation6 + $0x48] sm:$0xff]  }
 0x102   :  { %v1832_v32 = vld [vmem:[#allocation6 + $0x38] sm:$0xff]   ;;  %v1842_v42 = vld [vmem:[#allocation6 + $0x10] sm:$0xff]   ;;  %v1844_v44 = vld [vmem:[#allocation6 + $0x8] sm:$0xff]  }
 0x103   :  { %v284_v53 = vmax.f32 %v234_v47, 0.0  ;;  %v286_v54 = vmax.f32 %v277_v48, 0.0  ;;  %v2005_v61 = vpack.c.bf16 %v283_v49, %v279_v55  ;;  %v2007_v62 = vpack.c.bf16 %v285_v50, %v281_v56  ;;  %v1845_v45 = vld [vmem:[#allocation6 + $0x40] sm:$0xff]   ;;  %v1847_v47 = vld [vmem:[#allocation6 + $0xb8] sm:$0xff]   ;;  %v1848_v49 = vld [vmem:[#allocation6 + $0xb0] sm:$0xff]  }
 0x104   :  { %v1846_v46 = vld [vmem:[#allocation6] sm:$0xff]   ;;  %v1933_v48 = vmov 0.0   ;;  %v1849_v50 = vld [vmem:[#allocation6 + $0xa8] sm:$0xff]  }
 0x105   :  { %v288_v57 = vpack.c.bf16 %v284_v53, %v280_v51  ;;  %v290_v58 = vpack.c.bf16 %v286_v54, %v282_v52  ;;  %v1850_v51 = vld [vmem:[#allocation6 + $0xa0] sm:$0xff]   ;;  %v1851_v52 = vld [vmem:[#allocation6 + $0x98] sm:$0xff]   ;;  %v1852_v53 = vld [vmem:[#allocation6 + $0x90] sm:$0xff]  }
 0x106   :  { %v1853_v54 = vld [vmem:[#allocation6 + $0x88] sm:$0xff]   ;;  %v1854_v55 = vld [vmem:[#allocation6 + $0x80] sm:$0xff]  }
 0x107   :  { %980 = vmatprep.mubr.bf16.mxu0 %v288_v57  ;;  %1023 = vmatprep.mubr.bf16.mxu1 %v290_v58  ;;  %v419_v56 = vld [vmem:[%s2032_s4] sm:$0x7] }
 0x108   :  { %981 = vmatmul.mubr.bf16.vlgmr.msra.gmra.mxu0 %v2005_v61  ;;  %1024 = vmatmul.mubr.bf16.vlgmr.msra.gmra.mxu1 %v2007_v62 }
 0x109   :  { %1573 = vmatpush3.bf16.msra.mxu0 %v1801_v59  ;;  %1595 = vmatpush3.bf16.msra.mxu1 %v1802_v60 }
 0x10a   :  { %1066 = vmatprep.mubr.bf16.mxu0 %v288_v57  ;;  %1107 = vmatprep.mubr.bf16.mxu1 %v290_v58  ;;  %v428_v57 = vrot.slane %v419_v56, %v95_v24  ;;  %v424_v58 = vrot.slane %v419_v56, %v91_v26 }
 0x10b   :  { %1574 = vmatprep.subr.bf16.mxu0 %v1803_v63  ;;  %1596 = vmatprep.subr.bf16.mxu1 %v1804_v0 }
 0x10d   :  { %1575 = vmatpush3.bf16.msra.mxu0 %v1805_v1  ;;  %1597 = vmatpush3.bf16.msra.mxu1 %v1806_v2 }
 0x10e   :  { %1576 = vmatprep.subr.bf16.mxu0 %v1807_v3  ;;  %1598 = vmatprep.subr.bf16.mxu1 %v1808_v4 }
 0x111   :  { %1577 = vmatpush3.bf16.msra.mxu0 %v1809_v5  ;;  %1599 = vmatpush3.bf16.msra.mxu1 %v1810_v6 }
 0x112   :  { %1578 = vmatprep.subr.bf16.mxu0 %v1811_v7  ;;  %1600 = vmatprep.subr.bf16.mxu1 %v1812_v8 }
 0x115   :  { %1579 = vmatpush3.bf16.msra.mxu0 %v1813_v9  ;;  %1601 = vmatpush3.bf16.msra.mxu1 %v1814_v10 }
 0x116   :  { %1580 = vmatprep.subr.bf16.mxu0 %v1815_v11  ;;  %1602 = vmatprep.subr.bf16.mxu1 %v1816_v12 }
 0x119   :  { %1581 = vmatpush3.bf16.msra.mxu0 %v1817_v13  ;;  %1603 = vmatpush3.bf16.msra.mxu1 %v1818_v14 }
 0x11a   :  { %1582 = vmatprep.subr.bf16.mxu0 %v1819_v15  ;;  %1604 = vmatprep.subr.bf16.mxu1 %v1820_v16 }
 0x11d   :  { %1583 = vmatpush3.bf16.msra.mxu0 %v1821_v17  ;;  %1605 = vmatpush3.bf16.msra.mxu1 %v1822_v18  ;;  %v432_v17 = vrot.slane %v419_v56, %v99_v27 }
 0x11e   :  { %1584 = vmatprep.subr.bf16.mxu0 %v1823_v19  ;;  %1606 = vmatprep.subr.bf16.mxu1 %v1824_v20 }
 0x121   :  { %1585 = vmatpush3.bf16.msra.mxu0 %v1825_v21  ;;  %1607 = vmatpush3.bf16.msra.mxu1 %v1826_v22 }
 0x122   :  { %1586 = vmatprep.subr.bf16.mxu0 %v1827_v25  ;;  %1608 = vmatprep.subr.bf16.mxu1 %v1828_v28 }
 0x125   :  { %1587 = vmatpush3.bf16.msra.mxu0 %v1829_v29  ;;  %1609 = vmatpush3.bf16.msra.mxu1 %v1830_v30 }
 0x126   :  { %1616 = vmatprep.subr.bf16.mxu0 %v1831_v31  ;;  %1647 = vmatprep.subr.bf16.mxu1 %v1933_v48 }
 0x128   :  { %1067 = vmatmul.mubr.bf16.vlgmr.msra.gmra.mxu0 %v2005_v61  ;;  %1108 = vmatmul.mubr.bf16.vlgmr.msra.gmra.mxu1 %v2007_v62 }
 0x129   :  { %1617 = vmatpush3.bf16.msra.mxu0 %v1832_v32  ;;  %1648 = vmatpush3.bf16.msra.mxu1 %v1847_v47 }
 0x12a   :  { %1618 = vmatprep.subr.bf16.mxu0 %v1833_v33  ;;  %1649 = vmatprep.subr.bf16.mxu1 %v1933_v48 }
 0x12b   :  { %1663 = vmatprep.mubr.msk.bf16.mxu1 %vm1934_vm1, %v1933_v48 }
 0x12d   :  { %1619 = vmatpush3.bf16.msra.mxu0 %v1834_v34  ;;  %1650 = vmatpush3.bf16.msra.mxu1 %v1848_v49 }
 0x12e   :  { %1620 = vmatprep.subr.bf16.mxu0 %v1835_v35  ;;  %1651 = vmatprep.subr.bf16.mxu1 %v1933_v48 }
 0x131   :  { %1621 = vmatpush3.bf16.msra.mxu0 %v1836_v36  ;;  %1652 = vmatpush3.bf16.msra.mxu1 %v1849_v50 }
 0x132   :  { %1622 = vmatprep.subr.bf16.mxu0 %v1837_v37  ;;  %1653 = vmatprep.subr.bf16.mxu1 %v1933_v48 }
 0x135   :  { %1623 = vmatpush3.bf16.msra.mxu0 %v1838_v38  ;;  %1654 = vmatpush3.bf16.msra.mxu1 %v1850_v51 }
 0x136   :  { %1624 = vmatprep.subr.bf16.mxu0 %v1839_v39  ;;  %1655 = vmatprep.subr.bf16.mxu1 %v1933_v48 }
 0x139   :  { %1625 = vmatpush3.bf16.msra.mxu0 %v1840_v40  ;;  %1656 = vmatpush3.bf16.msra.mxu1 %v1851_v52 }
 0x13a   :  { %1626 = vmatprep.subr.bf16.mxu0 %v1841_v41  ;;  %1657 = vmatprep.subr.bf16.mxu1 %v1933_v48 }
 0x13d   :  { %1627 = vmatpush3.bf16.msra.mxu0 %v1842_v42  ;;  %1658 = vmatpush3.bf16.msra.mxu1 %v1852_v53  ;;  %v1538_v42 = vld [vmem:[%s2034_s6] ss:$0 sm:$0xff] }
 0x13e   :  { %1628 = vmatprep.subr.bf16.mxu0 %v1843_v43  ;;  %1659 = vmatprep.subr.bf16.mxu1 %v1933_v48 }
 0x141   :  { %1629 = vmatpush3.bf16.msra.mxu0 %v1844_v44  ;;  %1660 = vmatpush3.bf16.msra.mxu1 %v1853_v54 }
 0x142   :  { %1630 = vmatprep.subr.bf16.mxu0 %v1845_v45  ;;  %1661 = vmatprep.subr.bf16.mxu1 %v1933_v48 }
 0x145   :  { %1631 = vmatpush3.bf16.msra.mxu0 %v1846_v46  ;;  %1662 = vmatpush3.bf16.msra.mxu1 %v1854_v55 }
 0x1c8   :  { %v982_v59 = vpop.f32.mrf.mxu0  ;;  %v1025_v60 = vpop.f32.mrf.mxu1 }
 0x1c9   :  { %v983_v0 = vadd.f32 %v982_v59, %v424_v58 }
 0x1ca   :  { %v984_v61 = vpop.f32.mrf.mxu0  ;;  %v1027_v62 = vpop.f32.mrf.mxu1 }
 0x1cb   :  { %v985_v63 = vadd.f32 %v984_v61, %v428_v57  ;;  %v1026_v8 = vadd.f32 %v1025_v60, %v983_v0 }
 0x1cc   :  { %v986_v1 = vpop.f32.mrf.mxu0  ;;  %v1029_v2 = vpop.f32.mrf.mxu1 }
 0x1cd   :  { %v987_v3 = vadd.f32 %v986_v1, %v424_v58  ;;  %v1028_v5 = vadd.f32 %v1027_v62, %v985_v63  ;;  %v1116_v26 = vmax.f32 %v1026_v8, 0.0 }
 0x1ce   :  { %v988_v4 = vpop.f32.mrf.mxu0  ;;  %v1031_v9 = vpop.f32.mrf.mxu1 }
 0x1cf   :  { %v1030_v6 = vadd.f32 %v1029_v2, %v987_v3  ;;  %v989_v7 = vadd.f32 %v988_v4, %v428_v57  ;;  %v1117_v11 = vmax.f32 %v1028_v5, 0.0 }
 0x1d1   :  { %v1032_v10 = vadd.f32 %v1031_v9, %v989_v7  ;;  %v1119_v24 = vmax.f32 %v1030_v6, 0.0 }
 0x1d3   :  { %v1120_v12 = vmax.f32 %v1032_v10, 0.0  ;;  %v1122_v14 = vpack.c.bf16 %v1119_v24, %v1116_v26 }
 0x1d5   :  { %v1123_v13 = vpack.c.bf16 %v1120_v12, %v1117_v11 }
 0x1d7   :  { %1356 = vmatprep.mubr.bf16.mxu0 %v1123_v13 }
 0x1d8   :  { %1357 = vmatmul.mubr.bf16.vlgmr.msra.gmra.mxu0 %v1122_v14 }
 0x1e8   :  { %v1588_v15 = vpop.f32.mrf.mxu0  ;;  %v1610_v16 = vpop.f32.mrf.mxu1 }
 0x1ea   :  { %v1589_v18 = vpop.f32.mrf.mxu0  ;;  %v1611_v19 = vpop.f32.mrf.mxu1 }
 0x1eb   :  { %v1590_v20 = vadd.f32 %v1589_v18, %v1588_v15  ;;  %v1612_v30 = vadd.f32 %v1611_v19, %v1610_v16 }
 0x1ec   :  { %v1591_v21 = vpop.f32.mrf.mxu0  ;;  %v1613_v22 = vpop.f32.mrf.mxu1 }
 0x1ed   :  { %v1069_v25 = vadd.f32 %v1590_v20, %v432_v17 }
 0x1ee   :  { %v1592_v28 = vpop.f32.mrf.mxu0  ;;  %v1614_v29 = vpop.f32.mrf.mxu1 }
 0x1ef   :  { %v1593_v31 = vadd.f32 %v1592_v28, %v1591_v21  ;;  %v1110_v32 = vadd.f32 %v1612_v30, %v1069_v25  ;;  %v1615_v34 = vadd.f32 %v1614_v29, %v1613_v22 }
 0x1f1   :  { %v1072_v33 = vadd.f32 %v1593_v31, %v432_v17  ;;  %v1118_v36 = vmax.f32 %v1110_v32, 0.0 }
 0x1f3   :  { %v1113_v35 = vadd.f32 %v1615_v34, %v1072_v33 }
 0x1f5   :  { %v1121_v37 = vmax.f32 %v1113_v35, 0.0 }
 0x1f7   :  { %v1124_v38 = vpack.c.bf16 %v1121_v37, %v1118_v36 }
 0x1f9   :  { %1664 = vmatmul.mubr.bf16.vlgmr.msra.gmra.mxu1 %v1124_v38 }
 0x298   :  { %v1632_v23 = vpop.f32.mrf.mxu0 }
 0x29a   :  { %v1633_v27 = vpop.f32.mrf.mxu0 }
 0x29b   :  { %v1634_v40 = vadd.f32 %v1633_v27, %v1632_v23 }
 0x29c   :  { %v1635_v39 = vpop.f32.mrf.mxu0 }
 0x29d   :  { %v1359_v44 = vadd.f32 %v1634_v40, %v1538_v42 }
 0x29e   :  { %v1636_v41 = vpop.f32.mrf.mxu0 }
 0x29f   :  { %v1637_v43 = vadd.f32 %v1636_v41, %v1635_v39 }
 0x2a1   :  { %v1362_v48 = vadd.f32 %v1637_v43, %v1538_v42 }
 0x2b9   :  { %v1399_v45 = vpop.f32.mrf.mxu1 }
 0x2ba   :  { %v1400_v46 = vadd.f32 %v1399_v45, %v1359_v44 }
 0x2bb   :  { %v1665_v47 = vpop.f32.mrf.mxu1 }
 0x2bc   :  { %1855 = vtanh.f32 %v1400_v46 }
 0x2bd   :  { %v1402_v49 = vpop.f32.mrf.mxu1 }
 0x2be   :  { %v1403_v50 = vadd.f32 %v1402_v49, %v1362_v48 }
 0x2bf   :  { %v1666_v51 = vpop.f32.mrf.mxu1 }
 0x2c0   :  { %1857 = vtanh.f32 %v1403_v50 }
 0x2c9   :  { %v1856_v52 = vpop.eup %1855 }
 0x2cd   :  { %v1858_v53 = vpop.eup %1857 }
 0x2ce   :  { %v1570_v54 = vpack.c.bf16 %v1858_v53, %v1856_v52 }
 0x2d0   :  { %1571 = vst [vmem:[%s2035_s7] sm:$0xff] %v1570_v54  }
 0x2d1   :  { %1422 = vsyncpa [#allocation3], 1 }
 0x2d2   :  { %1423 = vsyncpa [#allocation5], 1 }

// kernel: _actor_forward_impl.1
= control target key start
LH: loop header
LB: loop body
LE: loop exit
PB: predicated region body
PF: predicated region fallthrough
CT: control target
= control target key end

     0   :  { %12 = vsyncpa [#allocation3], 0  ;;  %s2028_s0 = inlined_call_operand.vmem [shape: f32[16,64], index: 0, kind: input, shape index: {}]   ;;  %s2029_s1 = inlined_call_operand.hbm [shape: bf16[64,512], index: 1, kind: input, shape index: {}]   ;;  %s2030_s2 = inlined_call_operand.vmem [shape: f32[1,512], index: 2, kind: input, shape index: {}]   ;;  %s2031_s3 = inlined_call_operand.hbm [shape: bf16[512,384], index: 3, kind: input, shape index: {}]   ;;  %s2032_s4 = inlined_call_operand.vmem [shape: f32[1,384], index: 4, kind: input, shape index: {}]   ;;  %s2033_s5 = inlined_call_operand.hbm [shape: bf16[384,128], index: 5, kind: input, shape index: {}]   ;;  %s2034_s6 = inlined_call_operand.vmem [shape: f32[1,128], index: 6, kind: input, shape index: {}]   ;;  %s2035_s7 = inlined_call_operand.vmem [shape: bf16[16,128], index: 7, kind: output, shape index: {}]  }
   0x1   :  { %13 = vsyncpa [#allocation5], 0  ;;  %s1923_s24 = smov [#allocation4]  }
   0x2   :  { %s35_s25 = sshll.u32 %s1923_s24, 4  ;;  %s36_s25 = int_to_ptr.vmem [resolvable:$true] %s35_s25 }
   0x3   :  { %s1867_s26 = scalar_lea.vmem %s36_s25, 12288  ;;  %p1872_p1 = scmp.lt.s32.totalorder %s36_s25, %s36_s25 }
   0x4   :  { %p1868_p0 = scmp.ne.s32.totalorder %s36_s25, %s1867_s26  ;;  %p1873_p2 = scmp.lt.s32.totalorder %s1867_s26, %s1867_s26 }
   0x6   :  { %p1874_p3 = por %p1873_p2, %p1872_p1 }
   0x8   :  { %p1875_p4 = pnand %p1874_p3, %p1868_p0 }
   0xa   :  { %1878 = shalt.err (!%p1875_p4)
}
   0xb   :  { %s1924_s27 = smov 192   ;;  %s1925_s28 = smov 12  }
   0xc   :  { %41 = dma.hbm_to_vmem [thread:$0]  %s2031_s3, 12288, %s36_s25, [#allocation5], %s1924_s27, %s1924_s27, %s1925_s28  }
   0xd   :  { %s1926_s8 = smov [#allocation2]  }
   0xe   :  { %s21_s9 = sshll.u32 %s1926_s8, 4  ;;  %s22_s9 = int_to_ptr.vmem [resolvable:$true] %s21_s9 }
   0xf   :  { %s1887_s10 = scalar_lea.vmem %s22_s9, 2048  ;;  %p1892_p6 = scmp.lt.s32.totalorder %s22_s9, %s22_s9 }
  0x10   :  { %p1888_p5 = scmp.ne.s32.totalorder %s22_s9, %s1887_s10  ;;  %p1893_p7 = scmp.lt.s32.totalorder %s1887_s10, %s1887_s10 }
  0x12   :  { %p1894_p8 = por %p1893_p7, %p1892_p6 }
  0x14   :  { %p1895_p9 = pnand %p1894_p8, %p1888_p5 }
  0x16   :  { %1898 = shalt.err (!%p1895_p9)
}
  0x17   :  { %s1927_s11 = smov 256   ;;  %s1928_s12 = smov 16  }
  0x18   :  { %27 = dma.hbm_to_vmem [thread:$0]  %s2029_s1, 2048, %s22_s9, [#allocation3], %s1927_s11, %s1927_s11, %s1928_s12  }
  0x19   :  { %s1929_s15 = smov [#allocation6]  }
  0x1a   :  { %s49_s16 = sshll.u32 %s1929_s15, 4  ;;  %s50_s16 = int_to_ptr.vmem [resolvable:$true] %s49_s16 }
  0x1b   :  { %s1907_s3 = scalar_lea.vmem %s50_s16, 3072  ;;  %p1912_p11 = scmp.lt.s32.totalorder %s50_s16, %s50_s16 }
  0x1c   :  { %p1908_p10 = scmp.ne.s32.totalorder %s50_s16, %s1907_s3  ;;  %p1913_p12 = scmp.lt.s32.totalorder %s1907_s3, %s1907_s3 }
  0x1e   :  { %p1914_p13 = por %p1913_p12, %p1912_p11 }
  0x20   :  { %p1915_p0 = pnand %p1914_p13, %p1908_p10 }
  0x22   :  { %1918 = shalt.err (!%p1915_p0)
}
  0x23   :  { %s1930_s17 = smov 64   ;;  %s1931_s18 = smov 4  }
  0x24   :  { %55 = dma.hbm_to_vmem [thread:$0]  %s2033_s5, 3072, %s50_s16, [#allocation5], %s1930_s17, %s1930_s17, %s1931_s18  }
  0x25   :  { %1919 = dma.done.wait [#allocation3], 2048  }
  0x26   :  { %1920 = vsyncadd [#allocation3], 4294965248 }
  0x27   :  { %1921 = dma.done.wait [#allocation5], 15360  }
  0x28   :  { %1922 = vsyncadd [#allocation5], 4294951936  ;;  %v1932_v0 = vmov 0   ;;  %v1679_v1 = vld [vmem:[#allocation2 + $0x64] ss:$16 sps:$4 sm:$0xff]   ;;  %v69_v18 = vld [vmem:[%s2028_s0 + $0x8] sm:$0xff] }
  0x29   :  { %225 = vmatprep.mubr.bf16.mxu0 %v1932_v0  ;;  %268 = vmatprep.mubr.bf16.mxu1 %v1932_v0  ;;  %v1681_v2 = vld [vmem:[#allocation2 + $0x6c] ss:$16 sps:$4 sm:$0xff]   ;;  %v1683_v3 = vld [vmem:[#allocation2 + $0x60] ss:$16 sps:$4 sm:$0xff]   ;;  %v1684_v4 = vld [vmem:[#allocation2 + $0x68] ss:$16 sps:$4 sm:$0xff]  }
  0x2a   :  { %201 = vmatprep.subr.bf16.mxu0 %v1679_v1  ;;  %244 = vmatprep.subr.bf16.mxu1 %v1681_v2  ;;  %v1685_v5 = vld [vmem:[#allocation2 + $0x44] ss:$16 sps:$4 sm:$0xff]   ;;  %v1687_v6 = vld [vmem:[#allocation2 + $0x4c] ss:$16 sps:$4 sm:$0xff]   ;;  %v1689_v7 = vld [vmem:[#allocation2 + $0x40] ss:$16 sps:$4 sm:$0xff]  }
  0x2b   :  { %202 = vmatpush1.bf16.msra.mxu0 %v1683_v3  ;;  %245 = vmatpush1.bf16.msra.mxu1 %v1684_v4  ;;  %v1690_v8 = vld [vmem:[#allocation2 + $0x48] ss:$16 sps:$4 sm:$0xff]   ;;  %v1691_v9 = vld [vmem:[#allocation2 + $0x24] ss:$16 sps:$4 sm:$0xff]   ;;  %v1693_v10 = vld [vmem:[#allocation2 + $0x2c] ss:$16 sps:$4 sm:$0xff]  }
  0x2c   :  { %203 = vmatprep.subr.bf16.mxu0 %v1685_v5  ;;  %246 = vmatprep.subr.bf16.mxu1 %v1687_v6  ;;  %v1695_v11 = vld [vmem:[#allocation2 + $0x20] ss:$16 sps:$4 sm:$0xff]   ;;  %v1696_v12 = vld [vmem:[#allocation2 + $0x28] ss:$16 sps:$4 sm:$0xff]   ;;  %v1697_v13 = vld [vmem:[#allocation2 + $0x4] ss:$16 sps:$4 sm:$0xff]  }
  0x2d   :  { %v1699_v14 = vld [vmem:[#allocation2 + $0xc] ss:$16 sps:$4 sm:$0xff]   ;;  %v1701_v15 = vld [vmem:[#allocation2] ss:$16 sps:$4 sm:$0xff]   ;;  %v1702_v16 = vld [vmem:[#allocation2 + $0x8] ss:$16 sps:$4 sm:$0xff]  }
  0x2e   :  { %v68_v17 = vld [vmem:[%s2028_s0] sm:$0xff]  ;;  %v1705_v19 = vld [vmem:[#allocation4 + $0xac] ss:$12 sps:$4 sm:$0xff]   ;;  %vm189_vm0 = vcmask 523264   ;;  %v1703_v22 = vld [vmem:[#allocation4 + $0xa8] ss:$12 sps:$4 sm:$0xff]  }
  0x2f   :  { %204 = vmatpush1.bf16.msra.mxu0 %v1689_v7  ;;  %247 = vmatpush1.bf16.msra.mxu1 %v1690_v8  ;;  %v1708_v20 = vld [vmem:[#allocation4 + $0x22c] ss:$12 sps:$4 sm:$0xff]   ;;  %v70_v21 = vpack.c.bf16 %v69_v18, %v68_v17  ;;  %v1706_v23 = vld [vmem:[#allocation4 + $0x228] ss:$12 sps:$4 sm:$0xff]   ;;  %v1709_v26 = vld [vmem:[#allocation4 + $0x90] ss:$12 sps:$4 sm:$0xff]  }
  0x30   :  { %205 = vmatprep.subr.bf16.mxu0 %v1691_v9  ;;  %248 = vmatprep.subr.bf16.mxu1 %v1693_v10  ;;  %v1711_v24 = vld [vmem:[#allocation4 + $0x94] ss:$12 sps:$4 sm:$0xff]   ;;  %v1712_v27 = vld [vmem:[#allocation4 + $0x210] ss:$12 sps:$4 sm:$0xff]   ;;  %v1715_v30 = vld [vmem:[#allocation4 + $0x78] ss:$12 sps:$4 sm:$0xff]  }
  0x31   :  { %v1714_v25 = vld [vmem:[#allocation4 + $0x214] ss:$12 sps:$4 sm:$0xff]   ;;  %v1717_v28 = vld [vmem:[#allocation4 + $0x7c] ss:$12 sps:$4 sm:$0xff]   ;;  %v1718_v31 = vld [vmem:[#allocation4 + $0x1f8] ss:$12 sps:$4 sm:$0xff]  }
  0x32   :  { %v1720_v29 = vld [vmem:[#allocation4 + $0x1fc] ss:$12 sps:$4 sm:$0xff]   ;;  %v1723_v32 = vld [vmem:[#allocation4 + $0x64] ss:$12 sps:$4 sm:$0xff]   ;;  %v1721_v34 = vld [vmem:[#allocation4 + $0x60] ss:$12 sps:$4 sm:$0xff]  }
  0x33   :  { %206 = vmatpush1.bf16.msra.mxu0 %v1695_v11  ;;  %249 = vmatpush1.bf16.msra.mxu1 %v1696_v12  ;;  %v1726_v33 = vld [vmem:[#allocation4 + $0x1e4] ss:$12 sps:$4 sm:$0xff]   ;;  %v1724_v35 = vld [vmem:[#allocation4 + $0x1e0] ss:$12 sps:$4 sm:$0xff]   ;;  %v1727_v38 = vld [vmem:[#allocation4 + $0x48] ss:$12 sps:$4 sm:$0xff]  }
  0x34   :  { %207 = vmatprep.subr.bf16.mxu0 %v1697_v13  ;;  %250 = vmatprep.subr.bf16.mxu1 %v1699_v14  ;;  %v1729_v36 = vld [vmem:[#allocation4 + $0x4c] ss:$12 sps:$4 sm:$0xff]   ;;  %v1730_v39 = vld [vmem:[#allocation4 + $0x1c8] ss:$12 sps:$4 sm:$0xff]   ;;  %v1733_v42 = vld [vmem:[#allocation4 + $0x30] ss:$12 sps:$4 sm:$0xff]  }
  0x35   :  { %v1732_v37 = vld [vmem:[#allocation4 + $0x1cc] ss:$12 sps:$4 sm:$0xff]   ;;  %v1735_v40 = vld [vmem:[#allocation4 + $0x34] ss:$12 sps:$4 sm:$0xff]   ;;  %v1736_v43 = vld [vmem:[#allocation4 + $0x1b0] ss:$12 sps:$4 sm:$0xff]  }
  0x36   :  { %v1738_v41 = vld [vmem:[#allocation4 + $0x1b4] ss:$12 sps:$4 sm:$0xff]   ;;  %v1741_v44 = vld [vmem:[#allocation4 + $0x1c] ss:$12 sps:$4 sm:$0xff]   ;;  %v1739_v46 = vld [vmem:[#allocation4 + $0x18] ss:$12 sps:$4 sm:$0xff]  }
  0x37   :  { %208 = vmatpush1.bf16.msra.mxu0 %v1701_v15  ;;  %251 = vmatpush1.bf16.msra.mxu1 %v1702_v16  ;;  %v1744_v45 = vld [vmem:[#allocation4 + $0x19c] ss:$12 sps:$4 sm:$0xff]   ;;  %v1742_v47 = vld [vmem:[#allocation4 + $0x198] ss:$12 sps:$4 sm:$0xff]   ;;  %v1745_v50 = vld [vmem:[#allocation4] ss:$12 sps:$4 sm:$0xff]  }
  0x38   :  { %948 = vmatprep.subr.bf16.mxu0 %v1705_v19  ;;  %991 = vmatprep.subr.bf16.mxu1 %v1708_v20  ;;  %v1747_v48 = vld [vmem:[#allocation4 + $0x4] ss:$12 sps:$4 sm:$0xff]   ;;  %v1748_v51 = vld [vmem:[#allocation4 + $0x180] ss:$12 sps:$4 sm:$0xff]   ;;  %v1751_v54 = vld [vmem:[#allocation4 + $0x168] ss:$12 sps:$4 sm:$0xff]  }
  0x39   :  { %v1750_v49 = vld [vmem:[#allocation4 + $0x184] ss:$12 sps:$4 sm:$0xff]   ;;  %v1753_v52 = vld [vmem:[#allocation4 + $0x16c] ss:$12 sps:$4 sm:$0xff]   ;;  %v1754_v55 = vld [vmem:[#allocation4 + $0x2e8] ss:$12 sps:$4 sm:$0xff]  }
  0x3a   :  { %1440 = vmatmul.mubr.msk.bf16.vlgmr.msra.gmra.mxu0 %vm189_vm0, %v70_v21  ;;  %1441 = vmatmul.mubr.msk.bf16.vlgmr.msra.gmra.mxu1 %vm189_vm0, %v70_v21  ;;  %v1756_v53 = vld [vmem:[#allocation4 + $0x2ec] ss:$12 sps:$4 sm:$0xff]   ;;  %v1759_v56 = vld [vmem:[#allocation4 + $0x154] ss:$12 sps:$4 sm:$0xff]   ;;  %v1757_v58 = vld [vmem:[#allocation4 + $0x150] ss:$12 sps:$4 sm:$0xff]  }
  0x3b   :  { %949 = vmatpush1.bf16.msra.mxu0 %v1703_v22  ;;  %992 = vmatpush1.bf16.msra.mxu1 %v1706_v23  ;;  %v1762_v57 = vld [vmem:[#allocation4 + $0x2d4] ss:$12 sps:$4 sm:$0xff]   ;;  %v1760_v59 = vld [vmem:[#allocation4 + $0x2d0] ss:$12 sps:$4 sm:$0xff]   ;;  %v1763_v62 = vld [vmem:[#allocation4 + $0x138] ss:$12 sps:$4 sm:$0xff]   ;;  %v89_v22 = vlaneseq }
  0x3c   :  { %950 = vmatprep.subr.bf16.mxu0 %v1711_v24  ;;  %993 = vmatprep.subr.bf16.mxu1 %v1714_v25  ;;  %v1765_v60 = vld [vmem:[#allocation4 + $0x13c] ss:$12 sps:$4 sm:$0xff]   ;;  %v1766_v63 = vld [vmem:[#allocation4 + $0x2b8] ss:$12 sps:$4 sm:$0xff]   ;;  %v1769_v2 = vld [vmem:[#allocation4 + $0x120] ss:$12 sps:$4 sm:$0xff]  }
  0x3d   :  { %v1768_v61 = vld [vmem:[#allocation4 + $0x2bc] ss:$12 sps:$4 sm:$0xff]   ;;  %v1771_v0 = vld [vmem:[#allocation4 + $0x124] ss:$12 sps:$4 sm:$0xff]   ;;  %v1772_v3 = vld [vmem:[#allocation4 + $0x2a0] ss:$12 sps:$4 sm:$0xff]  }
  0x3e   :  { %v1774_v1 = vld [vmem:[#allocation4 + $0x2a4] ss:$12 sps:$4 sm:$0xff]   ;;  %v1777_v4 = vld [vmem:[#allocation4 + $0x10c] ss:$12 sps:$4 sm:$0xff]   ;;  %v1775_v6 = vld [vmem:[#allocation4 + $0x108] ss:$12 sps:$4 sm:$0xff]  }
  0x3f   :  { %951 = vmatpush1.bf16.msra.mxu0 %v1709_v26  ;;  %994 = vmatpush1.bf16.msra.mxu1 %v1712_v27  ;;  %v1780_v5 = vld [vmem:[#allocation4 + $0x28c] ss:$12 sps:$4 sm:$0xff]   ;;  %v1778_v7 = vld [vmem:[#allocation4 + $0x288] ss:$12 sps:$4 sm:$0xff]   ;;  %v1781_v10 = vld [vmem:[#allocation4 + $0xf0] ss:$12 sps:$4 sm:$0xff]  }
  0x40   :  { %952 = vmatprep.subr.bf16.mxu0 %v1717_v28  ;;  %995 = vmatprep.subr.bf16.mxu1 %v1720_v29  ;;  %v1783_v8 = vld [vmem:[#allocation4 + $0xf4] ss:$12 sps:$4 sm:$0xff]   ;;  %v1784_v11 = vld [vmem:[#allocation4 + $0x270] ss:$12 sps:$4 sm:$0xff]   ;;  %v1787_v14 = vld [vmem:[#allocation4 + $0xd8] ss:$12 sps:$4 sm:$0xff]  }
  0x41   :  { %v1786_v9 = vld [vmem:[#allocation4 + $0x274] ss:$12 sps:$4 sm:$0xff]   ;;  %v1789_v12 = vld [vmem:[#allocation4 + $0xdc] ss:$12 sps:$4 sm:$0xff]   ;;  %v1790_v15 = vld [vmem:[#allocation4 + $0x258] ss:$12 sps:$4 sm:$0xff]  }
  0x42   :  { %v1792_v13 = vld [vmem:[#allocation4 + $0x25c] ss:$12 sps:$4 sm:$0xff]   ;;  %v1795_v16 = vld [vmem:[#allocation4 + $0xc4] ss:$12 sps:$4 sm:$0xff]   ;;  %v1793_v18 = vld [vmem:[#allocation4 + $0xc0] ss:$12 sps:$4 sm:$0xff]  }
  0x43   :  { %953 = vmatpush1.bf16.msra.mxu0 %v1715_v30  ;;  %996 = vmatpush1.bf16.msra.mxu1 %v1718_v31  ;;  %v1798_v17 = vld [vmem:[#allocation4 + $0x244] ss:$12 sps:$4 sm:$0xff]   ;;  %v1796_v19 = vld [vmem:[#allocation4 + $0x240] ss:$12 sps:$4 sm:$0xff]   ;;  %v1990_v23 = vshrl.u32 %v89_v22, 7  ;;  %vm1934_vm1 = vmmov 0  }
  0x44   :  { %954 = vmatprep.subr.bf16.mxu0 %v1723_v32  ;;  %997 = vmatprep.subr.bf16.mxu1 %v1726_v33  ;;  %v1799_v20 = vld [vmem:[#allocation4 + $0x170] ss:$12 sps:$4 sm:$0xff]   ;;  %v87_v28 = vld [vmem:[%s2030_s2] sm:$0xf] }
  0x45   :  { %v1800_v21 = vld [vmem:[#allocation4 + $0x2f0] ss:$12 sps:$4 sm:$0xff]   ;;  %v95_v24 = vsub.s32 1, %v1990_v23  ;;  %v103_v25 = vsub.s32 3, %v1990_v23  ;;  %v91_v26 = vsub.s32 0, %v1990_v23  ;;  %v99_v27 = vsub.s32 2, %v1990_v23 }
  0x46   :  { %v1826_v22 = vld [vmem:[#allocation4 + $0x1a0] ss:$12 sps:$4 sm:$0xff]  }
  0x47   :  { %955 = vmatpush1.bf16.msra.mxu0 %v1721_v34  ;;  %998 = vmatpush1.bf16.msra.mxu1 %v1724_v35  ;;  %v96_v31 = vrot.slane %v87_v28, %v95_v24  ;;  %v104_v32 = vrot.slane %v87_v28, %v103_v25  ;;  %v92_v33 = vrot.slane %v87_v28, %v91_v26  ;;  %v1827_v25 = vld [vmem:[#allocation4 + $0xc8] ss:$12 sps:$4 sm:$0xff]  }
  0x48   :  { %956 = vmatprep.subr.bf16.mxu0 %v1729_v36  ;;  %999 = vmatprep.subr.bf16.mxu1 %v1732_v37  ;;  %v100_v34 = vrot.slane %v87_v28, %v99_v27  ;;  %v1828_v28 = vld [vmem:[#allocation4 + $0x248] ss:$12 sps:$4 sm:$0xff]  }
  0x4b   :  { %957 = vmatpush1.bf16.msra.mxu0 %v1727_v38  ;;  %1000 = vmatpush1.bf16.msra.mxu1 %v1730_v39 }
  0x4c   :  { %958 = vmatprep.subr.bf16.mxu0 %v1735_v40  ;;  %1001 = vmatprep.subr.bf16.mxu1 %v1738_v41 }
  0x4f   :  { %959 = vmatpush1.bf16.msra.mxu0 %v1733_v42  ;;  %1002 = vmatpush1.bf16.msra.mxu1 %v1736_v43 }
  0x50   :  { %960 = vmatprep.subr.bf16.mxu0 %v1741_v44  ;;  %1003 = vmatprep.subr.bf16.mxu1 %v1744_v45 }
  0x53   :  { %961 = vmatpush1.bf16.msra.mxu0 %v1739_v46  ;;  %1004 = vmatpush1.bf16.msra.mxu1 %v1742_v47 }
  0x54   :  { %962 = vmatprep.subr.bf16.mxu0 %v1747_v48  ;;  %1005 = vmatprep.subr.bf16.mxu1 %v1750_v49 }
  0x57   :  { %963 = vmatpush1.bf16.msra.mxu0 %v1745_v50  ;;  %1006 = vmatpush1.bf16.msra.mxu1 %v1748_v51 }
  0x58   :  { %964 = vmatprep.subr.bf16.mxu0 %v1753_v52  ;;  %1007 = vmatprep.subr.bf16.mxu1 %v1756_v53 }
  0x5b   :  { %965 = vmatpush2.bf16.msra.mxu0 %v1751_v54  ;;  %1008 = vmatpush2.bf16.msra.mxu1 %v1754_v55 }
  0x5c   :  { %966 = vmatprep.subr.bf16.mxu0 %v1759_v56  ;;  %1009 = vmatprep.subr.bf16.mxu1 %v1762_v57 }
  0x5f   :  { %967 = vmatpush2.bf16.msra.mxu0 %v1757_v58  ;;  %1010 = vmatpush2.bf16.msra.mxu1 %v1760_v59  ;;  %v1801_v59 = vld [vmem:[#allocation4 + $0xb0] ss:$12 sps:$4 sm:$0xff]  }
  0x60   :  { %968 = vmatprep.subr.bf16.mxu0 %v1765_v60  ;;  %1011 = vmatprep.subr.bf16.mxu1 %v1768_v61  ;;  %v1802_v60 = vld [vmem:[#allocation4 + $0x230] ss:$12 sps:$4 sm:$0xff]  }
  0x63   :  { %969 = vmatpush2.bf16.msra.mxu0 %v1763_v62  ;;  %1012 = vmatpush2.bf16.msra.mxu1 %v1766_v63  ;;  %v1803_v63 = vld [vmem:[#allocation4 + $0x158] ss:$12 sps:$4 sm:$0xff]  }
  0x64   :  { %970 = vmatprep.subr.bf16.mxu0 %v1771_v0  ;;  %1013 = vmatprep.subr.bf16.mxu1 %v1774_v1  ;;  %v1804_v0 = vld [vmem:[#allocation4 + $0x2d8] ss:$12 sps:$4 sm:$0xff]  }
  0x65   :  { %v1805_v1 = vld [vmem:[#allocation4 + $0x98] ss:$12 sps:$4 sm:$0xff]  }
  0x67   :  { %971 = vmatpush2.bf16.msra.mxu0 %v1769_v2  ;;  %1014 = vmatpush2.bf16.msra.mxu1 %v1772_v3  ;;  %v1806_v2 = vld [vmem:[#allocation4 + $0x218] ss:$12 sps:$4 sm:$0xff]   ;;  %v1807_v3 = vld [vmem:[#allocation4 + $0x140] ss:$12 sps:$4 sm:$0xff]  }
  0x68   :  { %972 = vmatprep.subr.bf16.mxu0 %v1777_v4  ;;  %1015 = vmatprep.subr.bf16.mxu1 %v1780_v5  ;;  %v1808_v4 = vld [vmem:[#allocation4 + $0x2c0] ss:$12 sps:$4 sm:$0xff]  }
  0x69   :  { %v1809_v5 = vld [vmem:[#allocation4 + $0x80] ss:$12 sps:$4 sm:$0xff]  }
  0x6b   :  { %973 = vmatpush2.bf16.msra.mxu0 %v1775_v6  ;;  %1016 = vmatpush2.bf16.msra.mxu1 %v1778_v7  ;;  %v1810_v6 = vld [vmem:[#allocation4 + $0x200] ss:$12 sps:$4 sm:$0xff]   ;;  %v1811_v7 = vld [vmem:[#allocation4 + $0x128] ss:$12 sps:$4 sm:$0xff]  }
  0x6c   :  { %974 = vmatprep.subr.bf16.mxu0 %v1783_v8  ;;  %1017 = vmatprep.subr.bf16.mxu1 %v1786_v9  ;;  %v1812_v8 = vld [vmem:[#allocation4 + $0x2a8] ss:$12 sps:$4 sm:$0xff]  }
  0x6d   :  { %v1813_v9 = vld [vmem:[#allocation4 + $0x68] ss:$12 sps:$4 sm:$0xff]  }
  0x6f   :  { %975 = vmatpush2.bf16.msra.mxu0 %v1781_v10  ;;  %1018 = vmatpush2.bf16.msra.mxu1 %v1784_v11  ;;  %v1814_v10 = vld [vmem:[#allocation4 + $0x1e8] ss:$12 sps:$4 sm:$0xff]   ;;  %v1815_v11 = vld [vmem:[#allocation4 + $0x110] ss:$12 sps:$4 sm:$0xff]  }
  0x70   :  { %976 = vmatprep.subr.bf16.mxu0 %v1789_v12  ;;  %1019 = vmatprep.subr.bf16.mxu1 %v1792_v13  ;;  %v1816_v12 = vld [vmem:[#allocation4 + $0x290] ss:$12 sps:$4 sm:$0xff]  }
  0x71   :  { %v1817_v13 = vld [vmem:[#allocation4 + $0x50] ss:$12 sps:$4 sm:$0xff]  }
  0x73   :  { %977 = vmatpush2.bf16.msra.mxu0 %v1787_v14  ;;  %1020 = vmatpush2.bf16.msra.mxu1 %v1790_v15  ;;  %v1818_v14 = vld [vmem:[#allocation4 + $0x1d0] ss:$12 sps:$4 sm:$0xff]   ;;  %v1819_v15 = vld [vmem:[#allocation4 + $0xf8] ss:$12 sps:$4 sm:$0xff]  }
  0x74   :  { %978 = vmatprep.subr.bf16.mxu0 %v1795_v16  ;;  %1021 = vmatprep.subr.bf16.mxu1 %v1798_v17  ;;  %v1820_v16 = vld [vmem:[#allocation4 + $0x278] ss:$12 sps:$4 sm:$0xff]  }
  0x75   :  { %v1821_v17 = vld [vmem:[#allocation4 + $0x38] ss:$12 sps:$4 sm:$0xff]  }
  0x77   :  { %979 = vmatpush2.bf16.msra.mxu0 %v1793_v18  ;;  %1022 = vmatpush2.bf16.msra.mxu1 %v1796_v19  ;;  %v1822_v18 = vld [vmem:[#allocation4 + $0x1b8] ss:$12 sps:$4 sm:$0xff]   ;;  %v1823_v19 = vld [vmem:[#allocation4 + $0xe0] ss:$12 sps:$4 sm:$0xff]  }
  0x78   :  { %1572 = vmatprep.subr.bf16.mxu0 %v1799_v20  ;;  %1594 = vmatprep.subr.bf16.mxu1 %v1800_v21  ;;  %v1824_v20 = vld [vmem:[#allocation4 + $0x260] ss:$12 sps:$4 sm:$0xff]  }
  0x79   :  { %v1825_v21 = vld [vmem:[#allocation4 + $0x20] ss:$12 sps:$4 sm:$0xff]  }
  0xfa   :  { %v227_v29 = vpop.f32.mrf.mxu0  ;;  %v270_v30 = vpop.f32.mrf.mxu1 }
  0xfb   :  { %v228_v43 = vadd.f32 %v227_v29, %v92_v33  ;;  %v271_v44 = vadd.f32 %v270_v30, %v100_v34  ;;  %v1829_v29 = vld [vmem:[#allocation4 + $0x8] ss:$12 sps:$4 sm:$0xff]  }
  0xfc   :  { %v229_v35 = vpop.f32.mrf.mxu0  ;;  %v272_v36 = vpop.f32.mrf.mxu1  ;;  %v1830_v30 = vld [vmem:[#allocation4 + $0x188] ss:$12 sps:$4 sm:$0xff]  }
  0xfd   :  { %v230_v39 = vadd.f32 %v229_v35, %v96_v31  ;;  %v273_v40 = vadd.f32 %v272_v36, %v104_v32  ;;  %v279_v55 = vmax.f32 %v228_v43, 0.0  ;;  %v281_v56 = vmax.f32 %v271_v44, 0.0  ;;  %v1835_v35 = vld [vmem:[#allocation6 + $0x68] sm:$0xff]  }
  0xfe   :  { %v231_v37 = vpop.f32.mrf.mxu0  ;;  %v274_v38 = vpop.f32.mrf.mxu1  ;;  %v1836_v36 = vld [vmem:[#allocation6 + $0x28] sm:$0xff]  }
  0xff   :  { %v232_v41 = vadd.f32 %v231_v37, %v92_v33  ;;  %v275_v42 = vadd.f32 %v274_v38, %v100_v34  ;;  %v280_v51 = vmax.f32 %v230_v39, 0.0  ;;  %v282_v52 = vmax.f32 %v273_v40, 0.0  ;;  %v1833_v33 = vld [vmem:[#allocation6 + $0x70] sm:$0xff]   ;;  %v1837_v37 = vld [vmem:[#allocation6 + $0x60] sm:$0xff]   ;;  %v1839_v39 = vld [vmem:[#allocation6 + $0x58] sm:$0xff]  }
 0x100   :  { %v233_v45 = vpop.f32.mrf.mxu0  ;;  %v276_v46 = vpop.f32.mrf.mxu1  ;;  %v1834_v34 = vld [vmem:[#allocation6 + $0x30] sm:$0xff]   ;;  %v1838_v38 = vld [vmem:[#allocation6 + $0x20] sm:$0xff]   ;;  %v1840_v40 = vld [vmem:[#allocation6 + $0x18] sm:$0xff]  }
 0x101   :  { %v234_v47 = vadd.f32 %v233_v45, %v96_v31  ;;  %v277_v48 = vadd.f32 %v276_v46, %v104_v32  ;;  %v283_v49 = vmax.f32 %v232_v41, 0.0  ;;  %v285_v50 = vmax.f32 %v275_v42, 0.0  ;;  %v1831_v31 = vld [vmem:[#allocation6 + $0x78] sm:$0xff]   ;;  %v1841_v41 = vld [vmem:[#allocation6 + $0x50] sm:$0xff]   ;;  %v1843_v43 = vld [vmem:[#allocation6 + $0x48] sm:$0xff]  }
 0x102   :  { %v1832_v32 = vld [vmem:[#allocation6 + $0x38] sm:$0xff]   ;;  %v1842_v42 = vld [vmem:[#allocation6 + $0x10] sm:$0xff]   ;;  %v1844_v44 = vld [vmem:[#allocation6 + $0x8] sm:$0xff]  }
 0x103   :  { %v284_v53 = vmax.f32 %v234_v47, 0.0  ;;  %v286_v54 = vmax.f32 %v277_v48, 0.0  ;;  %v2005_v61 = vpack.c.bf16 %v283_v49, %v279_v55  ;;  %v2007_v62 = vpack.c.bf16 %v285_v50, %v281_v56  ;;  %v1845_v45 = vld [vmem:[#allocation6 + $0x40] sm:$0xff]   ;;  %v1847_v47 = vld [vmem:[#allocation6 + $0xb8] sm:$0xff]   ;;  %v1848_v49 = vld [vmem:[#allocation6 + $0xb0] sm:$0xff]  }
 0x104   :  { %v1846_v46 = vld [vmem:[#allocation6] sm:$0xff]   ;;  %v1933_v48 = vmov 0.0   ;;  %v1849_v50 = vld [vmem:[#allocation6 + $0xa8] sm:$0xff]  }
 0x105   :  { %v288_v57 = vpack.c.bf16 %v284_v53, %v280_v51  ;;  %v290_v58 = vpack.c.bf16 %v286_v54, %v282_v52  ;;  %v1850_v51 = vld [vmem:[#allocation6 + $0xa0] sm:$0xff]   ;;  %v1851_v52 = vld [vmem:[#allocation6 + $0x98] sm:$0xff]   ;;  %v1852_v53 = vld [vmem:[#allocation6 + $0x90] sm:$0xff]  }
 0x106   :  { %v1853_v54 = vld [vmem:[#allocation6 + $0x88] sm:$0xff]   ;;  %v1854_v55 = vld [vmem:[#allocation6 + $0x80] sm:$0xff]  }
 0x107   :  { %980 = vmatprep.mubr.bf16.mxu0 %v288_v57  ;;  %1023 = vmatprep.mubr.bf16.mxu1 %v290_v58  ;;  %v419_v56 = vld [vmem:[%s2032_s4] sm:$0x7] }
 0x108   :  { %981 = vmatmul.mubr.bf16.vlgmr.msra.gmra.mxu0 %v2005_v61  ;;  %1024 = vmatmul.mubr.bf16.vlgmr.msra.gmra.mxu1 %v2007_v62 }
 0x109   :  { %1573 = vmatpush3.bf16.msra.mxu0 %v1801_v59  ;;  %1595 = vmatpush3.bf16.msra.mxu1 %v1802_v60 }
 0x10a   :  { %1066 = vmatprep.mubr.bf16.mxu0 %v288_v57  ;;  %1107 = vmatprep.mubr.bf16.mxu1 %v290_v58  ;;  %v428_v57 = vrot.slane %v419_v56, %v95_v24  ;;  %v424_v58 = vrot.slane %v419_v56, %v91_v26 }
 0x10b   :  { %1574 = vmatprep.subr.bf16.mxu0 %v1803_v63  ;;  %1596 = vmatprep.subr.bf16.mxu1 %v1804_v0 }
 0x10d   :  { %1575 = vmatpush3.bf16.msra.mxu0 %v1805_v1  ;;  %1597 = vmatpush3.bf16.msra.mxu1 %v1806_v2 }
 0x10e   :  { %1576 = vmatprep.subr.bf16.mxu0 %v1807_v3  ;;  %1598 = vmatprep.subr.bf16.mxu1 %v1808_v4 }
 0x111   :  { %1577 = vmatpush3.bf16.msra.mxu0 %v1809_v5  ;;  %1599 = vmatpush3.bf16.msra.mxu1 %v1810_v6 }
 0x112   :  { %1578 = vmatprep.subr.bf16.mxu0 %v1811_v7  ;;  %1600 = vmatprep.subr.bf16.mxu1 %v1812_v8 }
 0x115   :  { %1579 = vmatpush3.bf16.msra.mxu0 %v1813_v9  ;;  %1601 = vmatpush3.bf16.msra.mxu1 %v1814_v10 }
 0x116   :  { %1580 = vmatprep.subr.bf16.mxu0 %v1815_v11  ;;  %1602 = vmatprep.subr.bf16.mxu1 %v1816_v12 }
 0x119   :  { %1581 = vmatpush3.bf16.msra.mxu0 %v1817_v13  ;;  %1603 = vmatpush3.bf16.msra.mxu1 %v1818_v14 }
 0x11a   :  { %1582 = vmatprep.subr.bf16.mxu0 %v1819_v15  ;;  %1604 = vmatprep.subr.bf16.mxu1 %v1820_v16 }
 0x11d   :  { %1583 = vmatpush3.bf16.msra.mxu0 %v1821_v17  ;;  %1605 = vmatpush3.bf16.msra.mxu1 %v1822_v18  ;;  %v432_v17 = vrot.slane %v419_v56, %v99_v27 }
 0x11e   :  { %1584 = vmatprep.subr.bf16.mxu0 %v1823_v19  ;;  %1606 = vmatprep.subr.bf16.mxu1 %v1824_v20 }
 0x121   :  { %1585 = vmatpush3.bf16.msra.mxu0 %v1825_v21  ;;  %1607 = vmatpush3.bf16.msra.mxu1 %v1826_v22 }
 0x122   :  { %1586 = vmatprep.subr.bf16.mxu0 %v1827_v25  ;;  %1608 = vmatprep.subr.bf16.mxu1 %v1828_v28 }
 0x125   :  { %1587 = vmatpush3.bf16.msra.mxu0 %v1829_v29  ;;  %1609 = vmatpush3.bf16.msra.mxu1 %v1830_v30 }
 0x126   :  { %1616 = vmatprep.subr.bf16.mxu0 %v1831_v31  ;;  %1647 = vmatprep.subr.bf16.mxu1 %v1933_v48 }
 0x128   :  { %1067 = vmatmul.mubr.bf16.vlgmr.msra.gmra.mxu0 %v2005_v61  ;;  %1108 = vmatmul.mubr.bf16.vlgmr.msra.gmra.mxu1 %v2007_v62 }
 0x129   :  { %1617 = vmatpush3.bf16.msra.mxu0 %v1832_v32  ;;  %1648 = vmatpush3.bf16.msra.mxu1 %v1847_v47 }
 0x12a   :  { %1618 = vmatprep.subr.bf16.mxu0 %v1833_v33  ;;  %1649 = vmatprep.subr.bf16.mxu1 %v1933_v48 }
 0x12b   :  { %1663 = vmatprep.mubr.msk.bf16.mxu1 %vm1934_vm1, %v1933_v48 }
 0x12d   :  { %1619 = vmatpush3.bf16.msra.mxu0 %v1834_v34  ;;  %1650 = vmatpush3.bf16.msra.mxu1 %v1848_v49 }
 0x12e   :  { %1620 = vmatprep.subr.bf16.mxu0 %v1835_v35  ;;  %1651 = vmatprep.subr.bf16.mxu1 %v1933_v48 }
 0x131   :  { %1621 = vmatpush3.bf16.msra.mxu0 %v1836_v36  ;;  %1652 = vmatpush3.bf16.msra.mxu1 %v1849_v50 }
 0x132   :  { %1622 = vmatprep.subr.bf16.mxu0 %v1837_v37  ;;  %1653 = vmatprep.subr.bf16.mxu1 %v1933_v48 }
 0x135   :  { %1623 = vmatpush3.bf16.msra.mxu0 %v1838_v38  ;;  %1654 = vmatpush3.bf16.msra.mxu1 %v1850_v51 }
 0x136   :  { %1624 = vmatprep.subr.bf16.mxu0 %v1839_v39  ;;  %1655 = vmatprep.subr.bf16.mxu1 %v1933_v48 }
 0x139   :  { %1625 = vmatpush3.bf16.msra.mxu0 %v1840_v40  ;;  %1656 = vmatpush3.bf16.msra.mxu1 %v1851_v52 }
 0x13a   :  { %1626 = vmatprep.subr.bf16.mxu0 %v1841_v41  ;;  %1657 = vmatprep.subr.bf16.mxu1 %v1933_v48 }
 0x13d   :  { %1627 = vmatpush3.bf16.msra.mxu0 %v1842_v42  ;;  %1658 = vmatpush3.bf16.msra.mxu1 %v1852_v53  ;;  %v1538_v42 = vld [vmem:[%s2034_s6] ss:$0 sm:$0xff] }
 0x13e   :  { %1628 = vmatprep.subr.bf16.mxu0 %v1843_v43  ;;  %1659 = vmatprep.subr.bf16.mxu1 %v1933_v48 }
 0x141   :  { %1629 = vmatpush3.bf16.msra.mxu0 %v1844_v44  ;;  %1660 = vmatpush3.bf16.msra.mxu1 %v1853_v54 }
 0x142   :  { %1630 = vmatprep.subr.bf16.mxu0 %v1845_v45  ;;  %1661 = vmatprep.subr.bf16.mxu1 %v1933_v48 }
 0x145   :  { %1631 = vmatpush3.bf16.msra.mxu0 %v1846_v46  ;;  %1662 = vmatpush3.bf16.msra.mxu1 %v1854_v55 }
 0x1c8   :  { %v982_v59 = vpop.f32.mrf.mxu0  ;;  %v1025_v60 = vpop.f32.mrf.mxu1 }
 0x1c9   :  { %v983_v0 = vadd.f32 %v982_v59, %v424_v58 }
 0x1ca   :  { %v984_v61 = vpop.f32.mrf.mxu0  ;;  %v1027_v62 = vpop.f32.mrf.mxu1 }
 0x1cb   :  { %v985_v63 = vadd.f32 %v984_v61, %v428_v57  ;;  %v1026_v8 = vadd.f32 %v1025_v60, %v983_v0 }
 0x1cc   :  { %v986_v1 = vpop.f32.mrf.mxu0  ;;  %v1029_v2 = vpop.f32.mrf.mxu1 }
 0x1cd   :  { %v987_v3 = vadd.f32 %v986_v1, %v424_v58  ;;  %v1028_v5 = vadd.f32 %v1027_v62, %v985_v63  ;;  %v1116_v26 = vmax.f32 %v1026_v8, 0.0 }
 0x1ce   :  { %v988_v4 = vpop.f32.mrf.mxu0  ;;  %v1031_v9 = vpop.f32.mrf.mxu1 }
 0x1cf   :  { %v1030_v6 = vadd.f32 %v1029_v2, %v987_v3  ;;  %v989_v7 = vadd.f32 %v988_v4, %v428_v57  ;;  %v1117_v11 = vmax.f32 %v1028_v5, 0.0 }
 0x1d1   :  { %v1032_v10 = vadd.f32 %v1031_v9, %v989_v7  ;;  %v1119_v24 = vmax.f32 %v1030_v6, 0.0 }
 0x1d3   :  { %v1120_v12 = vmax.f32 %v1032_v10, 0.0  ;;  %v1122_v14 = vpack.c.bf16 %v1119_v24, %v1116_v26 }
 0x1d5   :  { %v1123_v13 = vpack.c.bf16 %v1120_v12, %v1117_v11 }
 0x1d7   :  { %1356 = vmatprep.mubr.bf16.mxu0 %v1123_v13 }
 0x1d8   :  { %1357 = vmatmul.mubr.bf16.vlgmr.msra.gmra.mxu0 %v1122_v14 }
 0x1e8   :  { %v1588_v15 = vpop.f32.mrf.mxu0  ;;  %v1610_v16 = vpop.f32.mrf.mxu1 }
 0x1ea   :  { %v1589_v18 = vpop.f32.mrf.mxu0  ;;  %v1611_v19 = vpop.f32.mrf.mxu1 }
 0x1eb   :  { %v1590_v20 = vadd.f32 %v1589_v18, %v1588_v15  ;;  %v1612_v30 = vadd.f32 %v1611_v19, %v1610_v16 }
 0x1ec   :  { %v1591_v21 = vpop.f32.mrf.mxu0  ;;  %v1613_v22 = vpop.f32.mrf.mxu1 }
 0x1ed   :  { %v1069_v25 = vadd.f32 %v1590_v20, %v432_v17 }
 0x1ee   :  { %v1592_v28 = vpop.f32.mrf.mxu0  ;;  %v1614_v29 = vpop.f32.mrf.mxu1 }
 0x1ef   :  { %v1593_v31 = vadd.f32 %v1592_v28, %v1591_v21  ;;  %v1110_v32 = vadd.f32 %v1612_v30, %v1069_v25  ;;  %v1615_v34 = vadd.f32 %v1614_v29, %v1613_v22 }
 0x1f1   :  { %v1072_v33 = vadd.f32 %v1593_v31, %v432_v17  ;;  %v1118_v36 = vmax.f32 %v1110_v32, 0.0 }
 0x1f3   :  { %v1113_v35 = vadd.f32 %v1615_v34, %v1072_v33 }
 0x1f5   :  { %v1121_v37 = vmax.f32 %v1113_v35, 0.0 }
 0x1f7   :  { %v1124_v38 = vpack.c.bf16 %v1121_v37, %v1118_v36 }
 0x1f9   :  { %1664 = vmatmul.mubr.bf16.vlgmr.msra.gmra.mxu1 %v1124_v38 }
 0x298   :  { %v1632_v23 = vpop.f32.mrf.mxu0 }
 0x29a   :  { %v1633_v27 = vpop.f32.mrf.mxu0 }
 0x29b   :  { %v1634_v40 = vadd.f32 %v1633_v27, %v1632_v23 }
 0x29c   :  { %v1635_v39 = vpop.f32.mrf.mxu0 }
 0x29d   :  { %v1359_v44 = vadd.f32 %v1634_v40, %v1538_v42 }
 0x29e   :  { %v1636_v41 = vpop.f32.mrf.mxu0 }
 0x29f   :  { %v1637_v43 = vadd.f32 %v1636_v41, %v1635_v39 }
 0x2a1   :  { %v1362_v48 = vadd.f32 %v1637_v43, %v1538_v42 }
 0x2b9   :  { %v1399_v45 = vpop.f32.mrf.mxu1 }
 0x2ba   :  { %v1400_v46 = vadd.f32 %v1399_v45, %v1359_v44 }
 0x2bb   :  { %v1665_v47 = vpop.f32.mrf.mxu1 }
 0x2bc   :  { %1855 = vtanh.f32 %v1400_v46 }
 0x2bd   :  { %v1402_v49 = vpop.f32.mrf.mxu1 }
 0x2be   :  { %v1403_v50 = vadd.f32 %v1402_v49, %v1362_v48 }
 0x2bf   :  { %v1666_v51 = vpop.f32.mrf.mxu1 }
 0x2c0   :  { %1857 = vtanh.f32 %v1403_v50 }
 0x2c9   :  { %v1856_v52 = vpop.eup %1855 }
 0x2cd   :  { %v1858_v53 = vpop.eup %1857 }
 0x2ce   :  { %v1570_v54 = vpack.c.bf16 %v1858_v53, %v1856_v52 }
 0x2d0   :  { %1571 = vst [vmem:[%s2035_s7] sm:$0xff] %v1570_v54  }
 0x2d1   :  { %1422 = vsyncpa [#allocation3], 1 }
 0x2d2   :  { %1423 = vsyncpa [#allocation5], 1 }

</bundles_post_ra>
